<compile_context>
chip_gen: v5e
topology: v5e:2x2
jax: 0.10.0
libtpu: 0.0.40
codegen_flags: <defaults>
</compile_context>

<pallas_src>
import numpy as np
import jax
import jax.numpy as jnp
from jax import lax
from jax.experimental import pallas as pl
from jax.experimental.pallas import tpu as pltpu


def _gaussian_kernel_1d(kernel_size: int, sigma: float) -> np.ndarray:
    # Mirrors create_gaussian_kernel(): ax = arange(-kernel_size//2 + 1.0, kernel_size//2 + 1.0)
    lo = (-kernel_size) // 2 + 1.0
    hi = kernel_size // 2 + 1.0
    ax = np.arange(lo, hi, dtype=np.float64)
    g = np.exp(-(ax ** 2) / (2.0 * sigma ** 2))
    g = g / np.sum(g)          # outer(g, g) == the normalized 2D Gaussian exactly
    return g.astype(np.float32)


def make_gaussian_smoothing_loss(sigma: float = 1.0, lane_tile: int = 128):
    kernel_size = int(2 * (3 * sigma) + 1)
    # For even kernel_size F.conv2d(padding=k//2) changes the spatial size and the
    # original module's `output - smoothed` would itself be ill-defined.
    assert kernel_size % 2 == 1, "only odd Gaussian kernel sizes are supported"
    pad = kernel_size // 2
    g1 = _gaussian_kernel_1d(kernel_size, sigma)
    taps = [float(v) for v in g1]                      # compile-time constants
    symmetric = bool(np.allclose(g1, g1[::-1]))        # true for the odd-size Gaussian

    def loss_fn(output: jax.Array) -> jax.Array:
        """output: (b, n, h, w) NCHW array -> scalar f32 loss."""
        b, c, h, wd = output.shape
        bc = b * c
        hp = h + 2 * pad           # H-padded staging rows
        wp = wd + 2 * pad          # W-padded H-pass intermediate cols

        # Free reshape (merges contiguous leading dims; no HBM pass, no transpose).
        x = output.reshape(bc, h, wd)

        tile = lane_tile if bc >= lane_tile else bc    # lane width of the compute layout
        num_tiles = pl.cdiv(bc, tile)
        need_mask = (bc % tile) != 0                   # garbage lanes only in last tile

        def kernel(x_ref, out_ref, stage_ref, tmp_ref):
            # x_ref    : (tile, h, wd)   input dtype, NCHW block straight from HBM
            # out_ref  : (1, wd, tile)   f32 per-tile partial sums (reduced over h)
            # stage_ref: (hp, wd, tile)  f32, H-padded channels-last staging buffer
            # tmp_ref  : (h, wp, tile)   f32, W-padded H-pass intermediate

            # ---- border-only zeroing (thin strips; no full-buffer memset) ----
            stage_ref[0:pad, :, :] = jnp.zeros((pad, wd, tile), jnp.float32)
            stage_ref[pad + h:hp, :, :] = jnp.zeros((pad, wd, tile), jnp.float32)
            tmp_ref[:, 0:pad, :] = jnp.zeros((h, pad, tile), jnp.float32)
            tmp_ref[:, pad + wd:wp, :] = jnp.zeros((h, pad, tile), jnp.float32)

            # ---- in-kernel chw -> hwc: h small minor-dim transposes (XLU slack) ----
            # 2-D minor-dim swaps are the reliably supported transpose form; done in
            # the input dtype so bf16 inputs stay bf16 until the f32 cast on store.
            if need_mask:
                rem = bc - pl.program_id(0) * tile     # valid lanes in this tile
                lane_ok = lax.broadcasted_iota(jnp.int32, (wd, tile), 1) < rem
            for i in range(h):
                row = x_ref[:, i, :].T.astype(jnp.float32)     # (wd, tile), lane-dense
                if need_mask:
                    row = jnp.where(lane_ok, row, 0.0)         # zero the garbage lanes
                stage_ref[pad + i, :, :] = row

            # ---- separable Gaussian; symmetric taps => 4 muls + 6 adds per pass ----
            def conv1d(tap_slice):
                if symmetric:
                    acc = taps[pad] * tap_slice(pad)
                    for d in range(pad):
                        acc = acc + taps[d] * (tap_slice(d) + tap_slice(kernel_size - 1 - d))
                else:
                    acc = taps[0] * tap_slice(0)
                    for d in range(1, kernel_size):
                        acc = acc + taps[d] * tap_slice(d)
                return acc

            # H pass: only the wd center columns exist in stage_ref (no zero-col work).
            tmp_ref[:, pad:pad + wd, :] = conv1d(lambda d: stage_ref[d:d + h, :, :])
            # W pass over the zero-bordered intermediate.
            sm = conv1d(lambda d: tmp_ref[:, d:d + wd, :])

            # Residual center re-read from the staging scratch (no long-lived xin).
            r = stage_ref[pad:pad + h, :, :] - sm
            # Reduce over H only: pure vreg adds; lane/sublane reduce happens outside.
            out_ref[0, :, :] = jnp.sum(r * r, axis=0)

        # Explicit scoped-VMEM budget (v5e default is only 16 MiB), clamped <= 64 MiB.
        itemsize = jnp.dtype(output.dtype).itemsize
        per_step = (2 * tile * h * wd * itemsize            # double-buffered input block
                    + (hp * wd + h * wp) * tile * 4         # staging + tmp scratch
                    + 2 * wd * tile * 4)                    # double-buffered output block
        vmem_limit = int(min(64 * 2 ** 20, max(32 * 2 ** 20, 4 * per_step)))

        partials = pl.pallas_call(
            kernel,
            out_shape=jax.ShapeDtypeStruct((num_tiles, wd, tile), jnp.float32),
            grid=(num_tiles,),
            in_specs=[pl.BlockSpec((tile, h, wd), lambda i: (i, 0, 0))],
            out_specs=pl.BlockSpec((1, wd, tile), lambda i: (i, 0, 0)),
            scratch_shapes=[pltpu.VMEM((hp, wd, tile), jnp.float32),
                            pltpu.VMEM((h, wp, tile), jnp.float32)],
            compiler_params=pltpu.CompilerParams(
                dimension_semantics=("parallel",),
                vmem_limit_bytes=vmem_limit),
        )(x)

        # Final lane/sublane/tile reduction done once, outside the kernel.
        return jnp.sum(partials)

    return loss_fn


def _reference_loss(output, sigma=1.0):
    """Plain-JAX reference (depthwise conv via lax.conv_general_dilated)."""
    kernel_size = int(2 * (3 * sigma) + 1)
    pad = kernel_size // 2
    g1 = jnp.asarray(_gaussian_kernel_1d(kernel_size, sigma))
    w2d = jnp.outer(g1, g1)
    b, c, h, wd = output.shape
    x = output.astype(jnp.float32)
    weight = jnp.broadcast_to(w2d[None, None], (c, 1, kernel_size, kernel_size))
    smoothed = lax.conv_general_dilated(
        x, weight, window_strides=(1, 1), padding=[(pad, pad), (pad, pad)],
        dimension_numbers=("NCHW", "OIHW", "NCHW"), feature_group_count=c)
    return jnp.sum((x - smoothed) ** 2)


if __name__ == "__main__":
    key = jax.random.PRNGKey(0)
    x = jax.random.normal(key, (2, 4, 16, 16), dtype=jnp.float32)  # b x n x h x w

    loss_fn = make_gaussian_smoothing_loss(sigma=1.0)
    loss = jax.block_until_ready(jax.jit(loss_fn)(x))

    ref = jax.block_until_ready(_reference_loss(x, sigma=1.0))
    np.testing.assert_allclose(np.asarray(loss), np.asarray(ref), rtol=1e-4, atol=1e-4)

    print("KERNEL_OK")
</pallas_src>

<mosaic_0001>
module attributes {stable_mosaic.version = 11 : i64} {
  func.func @kernel(%arg0: i32, %arg1: memref<8x16x16xf32, #tpu.memory_space<vmem>>, %arg2: memref<1x16x8xf32, #tpu.memory_space<vmem>>, %arg3: memref<22x16x8xf32, #tpu.memory_space<vmem>>, %arg4: memref<16x22x8xf32, #tpu.memory_space<vmem>>) attributes {dimension_semantics = [#tpu.dimension_semantics<parallel>], iteration_bounds = array<i64: 1>, scalar_prefetch = 0 : i64, scratch_operands = 2 : i64, tpu.core_type = #tpu.core_type<tc>, window_params = [{transform_indices = @transform_0, window_bounds = array<i64: 8, 16, 16>}, {transform_indices = @transform_1, window_bounds = array<i64: 1, 16, 8>}]} {
    %cst = arith.constant 0.000000e+00 : f32
    %0 = vector.broadcast %cst : f32 to vector<3x16x8xf32>
    %c0 = arith.constant 0 : index
    %c0_0 = arith.constant 0 : index
    %c0_1 = arith.constant 0 : index
    %1 = vector.load %arg3[%c0, %c0_0, %c0_1] : memref<22x16x8xf32, #tpu.memory_space<vmem>>, vector<3x16x8xf32>
    tpu.vector_store %arg3[%c0, %c0_0, %c0_1], %0 {strides = array<i32>} : memref<22x16x8xf32, #tpu.memory_space<vmem>>, vector<3x16x8xf32>,
    %cst_2 = arith.constant 0.000000e+00 : f32
    %2 = vector.broadcast %cst_2 : f32 to vector<3x16x8xf32>
    %c19 = arith.constant 19 : index
    %c0_3 = arith.constant 0 : index
    %c0_4 = arith.constant 0 : index
    %3 = vector.load %arg3[%c19, %c0_3, %c0_4] : memref<22x16x8xf32, #tpu.memory_space<vmem>>, vector<3x16x8xf32>
    tpu.vector_store %arg3[%c19, %c0_3, %c0_4], %2 {strides = array<i32>} : memref<22x16x8xf32, #tpu.memory_space<vmem>>, vector<3x16x8xf32>,
    %cst_5 = arith.constant 0.000000e+00 : f32
    %4 = vector.broadcast %cst_5 : f32 to vector<16x3x8xf32>
    %c0_6 = arith.constant 0 : index
    %c0_7 = arith.constant 0 : index
    %c0_8 = arith.constant 0 : index
    %5 = vector.load %arg4[%c0_6, %c0_7, %c0_8] : memref<16x22x8xf32, #tpu.memory_space<vmem>>, vector<16x3x8xf32>
    tpu.vector_store %arg4[%c0_6, %c0_7, %c0_8], %4 {strides = array<i32>} : memref<16x22x8xf32, #tpu.memory_space<vmem>>, vector<16x3x8xf32>,
    %cst_9 = arith.constant 0.000000e+00 : f32
    %6 = vector.broadcast %cst_9 : f32 to vector<16x3x8xf32>
    %c0_10 = arith.constant 0 : index
    %c19_11 = arith.constant 19 : index
    %c0_12 = arith.constant 0 : index
    %7 = vector.load %arg4[%c0_10, %c19_11, %c0_12] : memref<16x22x8xf32, #tpu.memory_space<vmem>>, vector<16x3x8xf32>
    tpu.vector_store %arg4[%c0_10, %c19_11, %c0_12], %6 {strides = array<i32>} : memref<16x22x8xf32, #tpu.memory_space<vmem>>, vector<16x3x8xf32>,
    %c0_13 = arith.constant 0 : index
    %c0_14 = arith.constant 0 : index
    %c0_15 = arith.constant 0 : index
    %8 = vector.load %arg1[%c0_13, %c0_14, %c0_15] : memref<8x16x16xf32, #tpu.memory_space<vmem>>, vector<8x1x16xf32>
    %9 = vector.shape_cast %8 : vector<8x1x16xf32> to vector<8x16xf32>
    %10 = tpu.transpose %9, [1, 0] : vector<8x16xf32> -> vector<16x8xf32>
    %c3 = arith.constant 3 : index
    %c0_16 = arith.constant 0 : index
    %c0_17 = arith.constant 0 : index
    %11 = vector.load %arg3[%c3, %c0_16, %c0_17] : memref<22x16x8xf32, #tpu.memory_space<vmem>>, vector<1x16x8xf32>
    %12 = vector.shape_cast %11 : vector<1x16x8xf32> to vector<16x8xf32>
    %13 = vector.shape_cast %10 : vector<16x8xf32> to vector<1x16x8xf32>
    tpu.vector_store %arg3[%c3, %c0_16, %c0_17], %13 {strides = array<i32>} : memref<22x16x8xf32, #tpu.memory_space<vmem>>, vector<1x16x8xf32>,
    %c0_18 = arith.constant 0 : index
    %c1 = arith.constant 1 : index
    %c0_19 = arith.constant 0 : index
    %14 = vector.load %arg1[%c0_18, %c1, %c0_19] : memref<8x16x16xf32, #tpu.memory_space<vmem>>, vector<8x1x16xf32>
    %15 = vector.shape_cast %14 : vector<8x1x16xf32> to vector<8x16xf32>
    %16 = tpu.transpose %15, [1, 0] : vector<8x16xf32> -> vector<16x8xf32>
    %c4 = arith.constant 4 : index
    %c0_20 = arith.constant 0 : index
    %c0_21 = arith.constant 0 : index
    %17 = vector.load %arg3[%c4, %c0_20, %c0_21] : memref<22x16x8xf32, #tpu.memory_space<vmem>>, vector<1x16x8xf32>
    %18 = vector.shape_cast %17 : vector<1x16x8xf32> to vector<16x8xf32>
    %19 = vector.shape_cast %16 : vector<16x8xf32> to vector<1x16x8xf32>
    tpu.vector_store %arg3[%c4, %c0_20, %c0_21], %19 {strides = array<i32>} : memref<22x16x8xf32, #tpu.memory_space<vmem>>, vector<1x16x8xf32>,
    %c0_22 = arith.constant 0 : index
    %c2 = arith.constant 2 : index
    %c0_23 = arith.constant 0 : index
    %20 = vector.load %arg1[%c0_22, %c2, %c0_23] : memref<8x16x16xf32, #tpu.memory_space<vmem>>, vector<8x1x16xf32>
    %21 = vector.shape_cast %20 : vector<8x1x16xf32> to vector<8x16xf32>
    %22 = tpu.transpose %21, [1, 0] : vector<8x16xf32> -> vector<16x8xf32>
    %c5 = arith.constant 5 : index
    %c0_24 = arith.constant 0 : index
    %c0_25 = arith.constant 0 : index
    %23 = vector.load %arg3[%c5, %c0_24, %c0_25] : memref<22x16x8xf32, #tpu.memory_space<vmem>>, vector<1x16x8xf32>
    %24 = vector.shape_cast %23 : vector<1x16x8xf32> to vector<16x8xf32>
    %25 = vector.shape_cast %22 : vector<16x8xf32> to vector<1x16x8xf32>
    tpu.vector_store %arg3[%c5, %c0_24, %c0_25], %25 {strides = array<i32>} : memref<22x16x8xf32, #tpu.memory_space<vmem>>, vector<1x16x8xf32>,
    %c0_26 = arith.constant 0 : index
    %c3_27 = arith.constant 3 : index
    %c0_28 = arith.constant 0 : index
    %26 = vector.load %arg1[%c0_26, %c3_27, %c0_28] : memref<8x16x16xf32, #tpu.memory_space<vmem>>, vector<8x1x16xf32>
    %27 = vector.shape_cast %26 : vector<8x1x16xf32> to vector<8x16xf32>
    %28 = tpu.transpose %27, [1, 0] : vector<8x16xf32> -> vector<16x8xf32>
    %c6 = arith.constant 6 : index
    %c0_29 = arith.constant 0 : index
    %c0_30 = arith.constant 0 : index
    %29 = vector.load %arg3[%c6, %c0_29, %c0_30] : memref<22x16x8xf32, #tpu.memory_space<vmem>>, vector<1x16x8xf32>
    %30 = vector.shape_cast %29 : vector<1x16x8xf32> to vector<16x8xf32>
    %31 = vector.shape_cast %28 : vector<16x8xf32> to vector<1x16x8xf32>
    tpu.vector_store %arg3[%c6, %c0_29, %c0_30], %31 {strides = array<i32>} : memref<22x16x8xf32, #tpu.memory_space<vmem>>, vector<1x16x8xf32>,
    %c0_31 = arith.constant 0 : index
    %c4_32 = arith.constant 4 : index
    %c0_33 = arith.constant 0 : index
    %32 = vector.load %arg1[%c0_31, %c4_32, %c0_33] : memref<8x16x16xf32, #tpu.memory_space<vmem>>, vector<8x1x16xf32>
    %33 = vector.shape_cast %32 : vector<8x1x16xf32> to vector<8x16xf32>
    %34 = tpu.transpose %33, [1, 0] : vector<8x16xf32> -> vector<16x8xf32>
    %c7 = arith.constant 7 : index
    %c0_34 = arith.constant 0 : index
    %c0_35 = arith.constant 0 : index
    %35 = vector.load %arg3[%c7, %c0_34, %c0_35] : memref<22x16x8xf32, #tpu.memory_space<vmem>>, vector<1x16x8xf32>
    %36 = vector.shape_cast %35 : vector<1x16x8xf32> to vector<16x8xf32>
    %37 = vector.shape_cast %34 : vector<16x8xf32> to vector<1x16x8xf32>
    tpu.vector_store %arg3[%c7, %c0_34, %c0_35], %37 {strides = array<i32>} : memref<22x16x8xf32, #tpu.memory_space<vmem>>, vector<1x16x8xf32>,
    %c0_36 = arith.constant 0 : index
    %c5_37 = arith.constant 5 : index
    %c0_38 = arith.constant 0 : index
    %38 = vector.load %arg1[%c0_36, %c5_37, %c0_38] : memref<8x16x16xf32, #tpu.memory_space<vmem>>, vector<8x1x16xf32>
    %39 = vector.shape_cast %38 : vector<8x1x16xf32> to vector<8x16xf32>
    %40 = tpu.transpose %39, [1, 0] : vector<8x16xf32> -> vector<16x8xf32>
    %c8 = arith.constant 8 : index
    %c0_39 = arith.constant 0 : index
    %c0_40 = arith.constant 0 : index
    %41 = vector.load %arg3[%c8, %c0_39, %c0_40] : memref<22x16x8xf32, #tpu.memory_space<vmem>>, vector<1x16x8xf32>
    %42 = vector.shape_cast %41 : vector<1x16x8xf32> to vector<16x8xf32>
    %43 = vector.shape_cast %40 : vector<16x8xf32> to vector<1x16x8xf32>
    tpu.vector_store %arg3[%c8, %c0_39, %c0_40], %43 {strides = array<i32>} : memref<22x16x8xf32, #tpu.memory_space<vmem>>, vector<1x16x8xf32>,
    %c0_41 = arith.constant 0 : index
    %c6_42 = arith.constant 6 : index
    %c0_43 = arith.constant 0 : index
    %44 = vector.load %arg1[%c0_41, %c6_42, %c0_43] : memref<8x16x16xf32, #tpu.memory_space<vmem>>, vector<8x1x16xf32>
    %45 = vector.shape_cast %44 : vector<8x1x16xf32> to vector<8x16xf32>
    %46 = tpu.transpose %45, [1, 0] : vector<8x16xf32> -> vector<16x8xf32>
    %c9 = arith.constant 9 : index
    %c0_44 = arith.constant 0 : index
    %c0_45 = arith.constant 0 : index
    %47 = vector.load %arg3[%c9, %c0_44, %c0_45] : memref<22x16x8xf32, #tpu.memory_space<vmem>>, vector<1x16x8xf32>
    %48 = vector.shape_cast %47 : vector<1x16x8xf32> to vector<16x8xf32>
    %49 = vector.shape_cast %46 : vector<16x8xf32> to vector<1x16x8xf32>
    tpu.vector_store %arg3[%c9, %c0_44, %c0_45], %49 {strides = array<i32>} : memref<22x16x8xf32, #tpu.memory_space<vmem>>, vector<1x16x8xf32>,
    %c0_46 = arith.constant 0 : index
    %c7_47 = arith.constant 7 : index
    %c0_48 = arith.constant 0 : index
    %50 = vector.load %arg1[%c0_46, %c7_47, %c0_48] : memref<8x16x16xf32, #tpu.memory_space<vmem>>, vector<8x1x16xf32>
    %51 = vector.shape_cast %50 : vector<8x1x16xf32> to vector<8x16xf32>
    %52 = tpu.transpose %51, [1, 0] : vector<8x16xf32> -> vector<16x8xf32>
    %c10 = arith.constant 10 : index
    %c0_49 = arith.constant 0 : index
    %c0_50 = arith.constant 0 : index
    %53 = vector.load %arg3[%c10, %c0_49, %c0_50] : memref<22x16x8xf32, #tpu.memory_space<vmem>>, vector<1x16x8xf32>
    %54 = vector.shape_cast %53 : vector<1x16x8xf32> to vector<16x8xf32>
    %55 = vector.shape_cast %52 : vector<16x8xf32> to vector<1x16x8xf32>
    tpu.vector_store %arg3[%c10, %c0_49, %c0_50], %55 {strides = array<i32>} : memref<22x16x8xf32, #tpu.memory_space<vmem>>, vector<1x16x8xf32>,
    %c0_51 = arith.constant 0 : index
    %c8_52 = arith.constant 8 : index
    %c0_53 = arith.constant 0 : index
    %56 = vector.load %arg1[%c0_51, %c8_52, %c0_53] : memref<8x16x16xf32, #tpu.memory_space<vmem>>, vector<8x1x16xf32>
    %57 = vector.shape_cast %56 : vector<8x1x16xf32> to vector<8x16xf32>
    %58 = tpu.transpose %57, [1, 0] : vector<8x16xf32> -> vector<16x8xf32>
    %c11 = arith.constant 11 : index
    %c0_54 = arith.constant 0 : index
    %c0_55 = arith.constant 0 : index
    %59 = vector.load %arg3[%c11, %c0_54, %c0_55] : memref<22x16x8xf32, #tpu.memory_space<vmem>>, vector<1x16x8xf32>
    %60 = vector.shape_cast %59 : vector<1x16x8xf32> to vector<16x8xf32>
    %61 = vector.shape_cast %58 : vector<16x8xf32> to vector<1x16x8xf32>
    tpu.vector_store %arg3[%c11, %c0_54, %c0_55], %61 {strides = array<i32>} : memref<22x16x8xf32, #tpu.memory_space<vmem>>, vector<1x16x8xf32>,
    %c0_56 = arith.constant 0 : index
    %c9_57 = arith.constant 9 : index
    %c0_58 = arith.constant 0 : index
    %62 = vector.load %arg1[%c0_56, %c9_57, %c0_58] : memref<8x16x16xf32, #tpu.memory_space<vmem>>, vector<8x1x16xf32>
    %63 = vector.shape_cast %62 : vector<8x1x16xf32> to vector<8x16xf32>
    %64 = tpu.transpose %63, [1, 0] : vector<8x16xf32> -> vector<16x8xf32>
    %c12 = arith.constant 12 : index
    %c0_59 = arith.constant 0 : index
    %c0_60 = arith.constant 0 : index
    %65 = vector.load %arg3[%c12, %c0_59, %c0_60] : memref<22x16x8xf32, #tpu.memory_space<vmem>>, vector<1x16x8xf32>
    %66 = vector.shape_cast %65 : vector<1x16x8xf32> to vector<16x8xf32>
    %67 = vector.shape_cast %64 : vector<16x8xf32> to vector<1x16x8xf32>
    tpu.vector_store %arg3[%c12, %c0_59, %c0_60], %67 {strides = array<i32>} : memref<22x16x8xf32, #tpu.memory_space<vmem>>, vector<1x16x8xf32>,
    %c0_61 = arith.constant 0 : index
    %c10_62 = arith.constant 10 : index
    %c0_63 = arith.constant 0 : index
    %68 = vector.load %arg1[%c0_61, %c10_62, %c0_63] : memref<8x16x16xf32, #tpu.memory_space<vmem>>, vector<8x1x16xf32>
    %69 = vector.shape_cast %68 : vector<8x1x16xf32> to vector<8x16xf32>
    %70 = tpu.transpose %69, [1, 0] : vector<8x16xf32> -> vector<16x8xf32>
    %c13 = arith.constant 13 : index
    %c0_64 = arith.constant 0 : index
    %c0_65 = arith.constant 0 : index
    %71 = vector.load %arg3[%c13, %c0_64, %c0_65] : memref<22x16x8xf32, #tpu.memory_space<vmem>>, vector<1x16x8xf32>
    %72 = vector.shape_cast %71 : vector<1x16x8xf32> to vector<16x8xf32>
    %73 = vector.shape_cast %70 : vector<16x8xf32> to vector<1x16x8xf32>
    tpu.vector_store %arg3[%c13, %c0_64, %c0_65], %73 {strides = array<i32>} : memref<22x16x8xf32, #tpu.memory_space<vmem>>, vector<1x16x8xf32>,
    %c0_66 = arith.constant 0 : index
    %c11_67 = arith.constant 11 : index
    %c0_68 = arith.constant 0 : index
    %74 = vector.load %arg1[%c0_66, %c11_67, %c0_68] : memref<8x16x16xf32, #tpu.memory_space<vmem>>, vector<8x1x16xf32>
    %75 = vector.shape_cast %74 : vector<8x1x16xf32> to vector<8x16xf32>
    %76 = tpu.transpose %75, [1, 0] : vector<8x16xf32> -> vector<16x8xf32>
    %c14 = arith.constant 14 : index
    %c0_69 = arith.constant 0 : index
    %c0_70 = arith.constant 0 : index
    %77 = vector.load %arg3[%c14, %c0_69, %c0_70] : memref<22x16x8xf32, #tpu.memory_space<vmem>>, vector<1x16x8xf32>
    %78 = vector.shape_cast %77 : vector<1x16x8xf32> to vector<16x8xf32>
    %79 = vector.shape_cast %76 : vector<16x8xf32> to vector<1x16x8xf32>
    tpu.vector_store %arg3[%c14, %c0_69, %c0_70], %79 {strides = array<i32>} : memref<22x16x8xf32, #tpu.memory_space<vmem>>, vector<1x16x8xf32>,
    %c0_71 = arith.constant 0 : index
    %c12_72 = arith.constant 12 : index
    %c0_73 = arith.constant 0 : index
    %80 = vector.load %arg1[%c0_71, %c12_72, %c0_73] : memref<8x16x16xf32, #tpu.memory_space<vmem>>, vector<8x1x16xf32>
    %81 = vector.shape_cast %80 : vector<8x1x16xf32> to vector<8x16xf32>
    %82 = tpu.transpose %81, [1, 0] : vector<8x16xf32> -> vector<16x8xf32>
    %c15 = arith.constant 15 : index
    %c0_74 = arith.constant 0 : index
    %c0_75 = arith.constant 0 : index
    %83 = vector.load %arg3[%c15, %c0_74, %c0_75] : memref<22x16x8xf32, #tpu.memory_space<vmem>>, vector<1x16x8xf32>
    %84 = vector.shape_cast %83 : vector<1x16x8xf32> to vector<16x8xf32>
    %85 = vector.shape_cast %82 : vector<16x8xf32> to vector<1x16x8xf32>
    tpu.vector_store %arg3[%c15, %c0_74, %c0_75], %85 {strides = array<i32>} : memref<22x16x8xf32, #tpu.memory_space<vmem>>, vector<1x16x8xf32>,
    %c0_76 = arith.constant 0 : index
    %c13_77 = arith.constant 13 : index
    %c0_78 = arith.constant 0 : index
    %86 = vector.load %arg1[%c0_76, %c13_77, %c0_78] : memref<8x16x16xf32, #tpu.memory_space<vmem>>, vector<8x1x16xf32>
    %87 = vector.shape_cast %86 : vector<8x1x16xf32> to vector<8x16xf32>
    %88 = tpu.transpose %87, [1, 0] : vector<8x16xf32> -> vector<16x8xf32>
    %c16 = arith.constant 16 : index
    %c0_79 = arith.constant 0 : index
    %c0_80 = arith.constant 0 : index
    %89 = vector.load %arg3[%c16, %c0_79, %c0_80] : memref<22x16x8xf32, #tpu.memory_space<vmem>>, vector<1x16x8xf32>
    %90 = vector.shape_cast %89 : vector<1x16x8xf32> to vector<16x8xf32>
    %91 = vector.shape_cast %88 : vector<16x8xf32> to vector<1x16x8xf32>
    tpu.vector_store %arg3[%c16, %c0_79, %c0_80], %91 {strides = array<i32>} : memref<22x16x8xf32, #tpu.memory_space<vmem>>, vector<1x16x8xf32>,
    %c0_81 = arith.constant 0 : index
    %c14_82 = arith.constant 14 : index
    %c0_83 = arith.constant 0 : index
    %92 = vector.load %arg1[%c0_81, %c14_82, %c0_83] : memref<8x16x16xf32, #tpu.memory_space<vmem>>, vector<8x1x16xf32>
    %93 = vector.shape_cast %92 : vector<8x1x16xf32> to vector<8x16xf32>
    %94 = tpu.transpose %93, [1, 0] : vector<8x16xf32> -> vector<16x8xf32>
    %c17 = arith.constant 17 : index
    %c0_84 = arith.constant 0 : index
    %c0_85 = arith.constant 0 : index
    %95 = vector.load %arg3[%c17, %c0_84, %c0_85] : memref<22x16x8xf32, #tpu.memory_space<vmem>>, vector<1x16x8xf32>
    %96 = vector.shape_cast %95 : vector<1x16x8xf32> to vector<16x8xf32>
    %97 = vector.shape_cast %94 : vector<16x8xf32> to vector<1x16x8xf32>
    tpu.vector_store %arg3[%c17, %c0_84, %c0_85], %97 {strides = array<i32>} : memref<22x16x8xf32, #tpu.memory_space<vmem>>, vector<1x16x8xf32>,
    %c0_86 = arith.constant 0 : index
    %c15_87 = arith.constant 15 : index
    %c0_88 = arith.constant 0 : index
    %98 = vector.load %arg1[%c0_86, %c15_87, %c0_88] : memref<8x16x16xf32, #tpu.memory_space<vmem>>, vector<8x1x16xf32>
    %99 = vector.shape_cast %98 : vector<8x1x16xf32> to vector<8x16xf32>
    %100 = tpu.transpose %99, [1, 0] : vector<8x16xf32> -> vector<16x8xf32>
    %c18 = arith.constant 18 : index
    %c0_89 = arith.constant 0 : index
    %c0_90 = arith.constant 0 : index
    %101 = vector.load %arg3[%c18, %c0_89, %c0_90] : memref<22x16x8xf32, #tpu.memory_space<vmem>>, vector<1x16x8xf32>
    %102 = vector.shape_cast %101 : vector<1x16x8xf32> to vector<16x8xf32>
    %103 = vector.shape_cast %100 : vector<16x8xf32> to vector<1x16x8xf32>
    tpu.vector_store %arg3[%c18, %c0_89, %c0_90], %103 {strides = array<i32>} : memref<22x16x8xf32, #tpu.memory_space<vmem>>, vector<1x16x8xf32>,
    %c3_91 = arith.constant 3 : index
    %c0_92 = arith.constant 0 : index
    %c0_93 = arith.constant 0 : index
    %104 = vector.load %arg3[%c3_91, %c0_92, %c0_93] : memref<22x16x8xf32, #tpu.memory_space<vmem>>, vector<16x16x8xf32>
    %cst_94 = arith.constant 0.399050266 : f32
    %105 = vector.broadcast %cst_94 : f32 to vector<16x16x8xf32>
    %106 = arith.mulf %105, %104 : vector<16x16x8xf32>
    %c0_95 = arith.constant 0 : index
    %c0_96 = arith.constant 0 : index
    %c0_97 = arith.constant 0 : index
    %107 = vector.load %arg3[%c0_95, %c0_96, %c0_97] : memref<22x16x8xf32, #tpu.memory_space<vmem>>, vector<16x16x8xf32>
    %c6_98 = arith.constant 6 : index
    %c0_99 = arith.constant 0 : index
    %c0_100 = arith.constant 0 : index
    %108 = vector.load %arg3[%c6_98, %c0_99, %c0_100] : memref<22x16x8xf32, #tpu.memory_space<vmem>>, vector<16x16x8xf32>
    %109 = arith.addf %107, %108 : vector<16x16x8xf32>
    %cst_101 = arith.constant 0.00443304796 : f32
    %110 = vector.broadcast %cst_101 : f32 to vector<16x16x8xf32>
    %111 = arith.mulf %110, %109 : vector<16x16x8xf32>
    %112 = arith.addf %106, %111 : vector<16x16x8xf32>
    %c1_102 = arith.constant 1 : index
    %c0_103 = arith.constant 0 : index
    %c0_104 = arith.constant 0 : index
    %113 = vector.load %arg3[%c1_102, %c0_103, %c0_104] : memref<22x16x8xf32, #tpu.memory_space<vmem>>, vector<16x16x8xf32>
    %c5_105 = arith.constant 5 : index
    %c0_106 = arith.constant 0 : index
    %c0_107 = arith.constant 0 : index
    %114 = vector.load %arg3[%c5_105, %c0_106, %c0_107] : memref<22x16x8xf32, #tpu.memory_space<vmem>>, vector<16x16x8xf32>
    %115 = arith.addf %113, %114 : vector<16x16x8xf32>
    %cst_108 = arith.constant 0.0540055819 : f32
    %116 = vector.broadcast %cst_108 : f32 to vector<16x16x8xf32>
    %117 = arith.mulf %116, %115 : vector<16x16x8xf32>
    %118 = arith.addf %112, %117 : vector<16x16x8xf32>
    %c2_109 = arith.constant 2 : index
    %c0_110 = arith.constant 0 : index
    %c0_111 = arith.constant 0 : index
    %119 = vector.load %arg3[%c2_109, %c0_110, %c0_111] : memref<22x16x8xf32, #tpu.memory_space<vmem>>, vector<16x16x8xf32>
    %c4_112 = arith.constant 4 : index
    %c0_113 = arith.constant 0 : index
    %c0_114 = arith.constant 0 : index
    %120 = vector.load %arg3[%c4_112, %c0_113, %c0_114] : memref<22x16x8xf32, #tpu.memory_space<vmem>>, vector<16x16x8xf32>
    %121 = arith.addf %119, %120 : vector<16x16x8xf32>
    %cst_115 = arith.constant 0.242036223 : f32
    %122 = vector.broadcast %cst_115 : f32 to vector<16x16x8xf32>
    %123 = arith.mulf %122, %121 : vector<16x16x8xf32>
    %124 = arith.addf %118, %123 : vector<16x16x8xf32>
    %c0_116 = arith.constant 0 : index
    %c3_117 = arith.constant 3 : index
    %c0_118 = arith.constant 0 : index
    %125 = vector.load %arg4[%c0_116, %c3_117, %c0_118] : memref<16x22x8xf32, #tpu.memory_space<vmem>>, vector<16x16x8xf32>
    tpu.vector_store %arg4[%c0_116, %c3_117, %c0_118], %124 {strides = array<i32>} : memref<16x22x8xf32, #tpu.memory_space<vmem>>, vector<16x16x8xf32>,
    %c0_119 = arith.constant 0 : index
    %c3_120 = arith.constant 3 : index
    %c0_121 = arith.constant 0 : index
    %126 = vector.load %arg4[%c0_119, %c3_120, %c0_121] : memref<16x22x8xf32, #tpu.memory_space<vmem>>, vector<16x16x8xf32>
    %cst_122 = arith.constant 0.399050266 : f32
    %127 = vector.broadcast %cst_122 : f32 to vector<16x16x8xf32>
    %128 = arith.mulf %127, %126 : vector<16x16x8xf32>
    %c0_123 = arith.constant 0 : index
    %c0_124 = arith.constant 0 : index
    %c0_125 = arith.constant 0 : index
    %129 = vector.load %arg4[%c0_123, %c0_124, %c0_125] : memref<16x22x8xf32, #tpu.memory_space<vmem>>, vector<16x16x8xf32>
    %c0_126 = arith.constant 0 : index
    %c6_127 = arith.constant 6 : index
    %c0_128 = arith.constant 0 : index
    %130 = vector.load %arg4[%c0_126, %c6_127, %c0_128] : memref<16x22x8xf32, #tpu.memory_space<vmem>>, vector<16x16x8xf32>
    %131 = arith.addf %129, %130 : vector<16x16x8xf32>
    %cst_129 = arith.constant 0.00443304796 : f32
    %132 = vector.broadcast %cst_129 : f32 to vector<16x16x8xf32>
    %133 = arith.mulf %132, %131 : vector<16x16x8xf32>
    %134 = arith.addf %128, %133 : vector<16x16x8xf32>
    %c0_130 = arith.constant 0 : index
    %c1_131 = arith.constant 1 : index
    %c0_132 = arith.constant 0 : index
    %135 = vector.load %arg4[%c0_130, %c1_131, %c0_132] : memref<16x22x8xf32, #tpu.memory_space<vmem>>, vector<16x16x8xf32>
    %c0_133 = arith.constant 0 : index
    %c5_134 = arith.constant 5 : index
    %c0_135 = arith.constant 0 : index
    %136 = vector.load %arg4[%c0_133, %c5_134, %c0_135] : memref<16x22x8xf32, #tpu.memory_space<vmem>>, vector<16x16x8xf32>
    %137 = arith.addf %135, %136 : vector<16x16x8xf32>
    %cst_136 = arith.constant 0.0540055819 : f32
    %138 = vector.broadcast %cst_136 : f32 to vector<16x16x8xf32>
    %139 = arith.mulf %138, %137 : vector<16x16x8xf32>
    %140 = arith.addf %134, %139 : vector<16x16x8xf32>
    %c0_137 = arith.constant 0 : index
    %c2_138 = arith.constant 2 : index
    %c0_139 = arith.constant 0 : index
    %141 = vector.load %arg4[%c0_137, %c2_138, %c0_139] : memref<16x22x8xf32, #tpu.memory_space<vmem>>, vector<16x16x8xf32>
    %c0_140 = arith.constant 0 : index
    %c4_141 = arith.constant 4 : index
    %c0_142 = arith.constant 0 : index
    %142 = vector.load %arg4[%c0_140, %c4_141, %c0_142] : memref<16x22x8xf32, #tpu.memory_space<vmem>>, vector<16x16x8xf32>
    %143 = arith.addf %141, %142 : vector<16x16x8xf32>
    %cst_143 = arith.constant 0.242036223 : f32
    %144 = vector.broadcast %cst_143 : f32 to vector<16x16x8xf32>
    %145 = arith.mulf %144, %143 : vector<16x16x8xf32>
    %146 = arith.addf %140, %145 : vector<16x16x8xf32>
    %c3_144 = arith.constant 3 : index
    %c0_145 = arith.constant 0 : index
    %c0_146 = arith.constant 0 : index
    %147 = vector.load %arg3[%c3_144, %c0_145, %c0_146] : memref<22x16x8xf32, #tpu.memory_space<vmem>>, vector<16x16x8xf32>
    %148 = arith.subf %147, %146 : vector<16x16x8xf32>
    %149 = arith.mulf %148, %148 : vector<16x16x8xf32>
    %cst_147 = arith.constant dense<0.000000e+00> : vector<16x8xf32>
    %150 = vector.multi_reduction <add>, %149, %cst_147 [0] : vector<16x16x8xf32> to vector<16x8xf32>
    %c0_148 = arith.constant 0 : index
    %c0_149 = arith.constant 0 : index
    %c0_150 = arith.constant 0 : index
    %151 = vector.load %arg2[%c0_148, %c0_149, %c0_150] : memref<1x16x8xf32, #tpu.memory_space<vmem>>, vector<1x16x8xf32>
    %152 = vector.shape_cast %151 : vector<1x16x8xf32> to vector<16x8xf32>
    %153 = vector.shape_cast %150 : vector<16x8xf32> to vector<1x16x8xf32>
    tpu.vector_store %arg2[%c0_148, %c0_149, %c0_150], %153 {strides = array<i32>} : memref<1x16x8xf32, #tpu.memory_space<vmem>>, vector<1x16x8xf32>,
    return
  }
  func.func @transform_0(%arg0: i32) -> (i32, i32, i32) {
    %c0_i32 = arith.constant 0 : i32
    %c0_i32_0 = arith.constant 0 : i32
    %c0_i32_1 = arith.constant 0 : i32
    return %arg0, %c0_i32, %c0_i32_0 : i32, i32, i32
  }
  func.func @transform_1(%arg0: i32) -> (i32, i32, i32) {
    %c0_i32 = arith.constant 0 : i32
    %c0_i32_0 = arith.constant 0 : i32
    %c0_i32_1 = arith.constant 0 : i32
    return %arg0, %c0_i32, %c0_i32_0 : i32, i32, i32
  }
}

</mosaic_0001>

<bundles_post_ra>
// kernel: loss_fn.1
= control target key start
LH: loop header
LB: loop body
LE: loop exit
PB: predicated region body
PF: predicated region fallthrough
CT: control target
= control target key end

     0   :  { %6 = vsyncpa [#allocation5], 0  ;;  %s2469_s9 = smov [#allocation4]   ;;  %s2470_s11 = smov 128   ;;  %s3499_s0 = inlined_call_operand.hbm [shape: f32[8,16,16], index: 0, kind: input, shape index: {}]   ;;  %s3500_s1 = inlined_call_operand.vmem [shape: f32[1,16,8], index: 1, kind: output, shape index: {}]  }
   0x1   :  { %s11_s8 = sshll.u32 %s3499_s0, 4  ;;  %s13_s10 = sshll.u32 %s2469_s9, 4  ;;  %s12_s8 = int_to_ptr.hbm [resolvable:$true] %s11_s8  ;;  %s14_s10 = int_to_ptr.vmem [resolvable:$true] %s13_s10 }
   0x2   :  { %s2471_s12 = smov 8  }
   0x3   :  { %19 = dma.hbm_to_vmem [thread:$0]  %s12_s8, 2048, %s14_s10, [#allocation5], %s2470_s11, %s2470_s11, %s2471_s12  }
   0x4   :  { %2467 = dma.done.wait [#allocation5], 2048  }
   0x5   :  { %2468 = vsyncadd [#allocation5], 4294965248  ;;  %vm88_vm0 = vcmask 1041409   ;;  %vm91_vm1 = vcmask 1042434   ;;  %vm94_vm2 = vcmask 1043459   ;;  %vm97_vm3 = vcmask 1044484  }
   0x6   :  { %vm100_vm4 = vcmask 1045509   ;;  %vm103_vm5 = vcmask 1046534   ;;  %v276_v0 = vld [vmem:[#allocation4 + $0x3] sm:$0x1]  ;;  %v277_v1 = vld [vmem:[#allocation4 + $0x13] sm:$0x1] }
   0x7   :  { %v278_v2 = vld [vmem:[#allocation4 + $0x23] sm:$0x1]  ;;  %v279_v3 = vld [vmem:[#allocation4 + $0x33] sm:$0x1]  ;;  %v292_v8 = vrot.slane %v277_v1, 7  ;;  %vm106_vm6 = vcmask 1047559  }
   0x8   :  { %v280_v4 = vld [vmem:[#allocation4 + $0x43] sm:$0x1]  ;;  %v281_v5 = vld [vmem:[#allocation4 + $0x53] sm:$0x1]  ;;  %v294_v9 = vrot.slane %v278_v2, 6  ;;  %v296_v10 = vrot.slane %v279_v3, 5 }
   0x9   :  { %v282_v6 = vld [vmem:[#allocation4 + $0x63] sm:$0x1]  ;;  %v283_v7 = vld [vmem:[#allocation4 + $0x73] sm:$0x1]  ;;  %v298_v11 = vrot.slane %v280_v4, 4  ;;  %v300_v12 = vrot.slane %v281_v5, 3  ;;  %v293_v14 = vsel %vm88_vm0, %v292_v8, %v276_v0 }
   0xa   :  { %v210_v13 = vld [vmem:[#allocation4 + $0x2] sm:$0x1]  ;;  %v302_v15 = vrot.slane %v282_v6, 2  ;;  %v304_v16 = vrot.slane %v283_v7, 1  ;;  %v211_v17 = vld [vmem:[#allocation4 + $0x12] sm:$0x1]  ;;  %v295_v19 = vsel %vm91_vm1, %v294_v9, %v293_v14 }
   0xb   :  { %v212_v18 = vld [vmem:[#allocation4 + $0x22] sm:$0x1]  ;;  %v213_v20 = vld [vmem:[#allocation4 + $0x32] sm:$0x1]  ;;  %v297_v23 = vsel %vm94_vm2, %v296_v10, %v295_v19  ;;  %v226_v26 = vrot.slane %v211_v17, 7  ;;  %vm24_vm7 = vcmask 64512  }
   0xc   :  { %v214_v21 = vld [vmem:[#allocation4 + $0x42] sm:$0x1]  ;;  %v215_v22 = vld [vmem:[#allocation4 + $0x52] sm:$0x1]  ;;  %v228_v27 = vrot.slane %v212_v18, 6  ;;  %v299_v28 = vsel %vm97_vm3, %v298_v11, %v297_v23  ;;  %v230_v29 = vrot.slane %v213_v20, 5 }
   0xd   :  { %v216_v24 = vld [vmem:[#allocation4 + $0x62] sm:$0x1]  ;;  %v217_v25 = vld [vmem:[#allocation4 + $0x72] sm:$0x1]  ;;  %v232_v30 = vrot.slane %v214_v21, 4  ;;  %v234_v31 = vrot.slane %v215_v22, 3  ;;  %v301_v33 = vsel %vm100_vm4, %v300_v12, %v299_v28  ;;  %v227_v34 = vsel %vm88_vm0, %v226_v26, %v210_v13 }
   0xe   :  { %v71_v32 = vld [vmem:[#allocation4] sm:$0x1]  ;;  %v236_v35 = vrot.slane %v216_v24, 2  ;;  %v238_v36 = vrot.slane %v217_v25, 1  ;;  %v72_v37 = vld [vmem:[#allocation4 + $0x10] sm:$0x1]  ;;  %v303_v39 = vsel %vm103_vm5, %v302_v15, %v301_v33  ;;  %v229_v40 = vsel %vm91_vm1, %v228_v27, %v227_v34 }
   0xf   :  { %v73_v38 = vld [vmem:[#allocation4 + $0x20] sm:$0x1]  ;;  %v74_v41 = vld [vmem:[#allocation4 + $0x30] sm:$0x1]  ;;  %v305_v44 = vsel %vm106_vm6, %v304_v16, %v303_v39  ;;  %v231_v45 = vsel %vm94_vm2, %v230_v29, %v229_v40  ;;  %v87_v48 = vrot.slane %v72_v37, 7  ;;  %vm38_vm8 = vcmask 59392  }
  0x10   :  { %v75_v42 = vld [vmem:[#allocation4 + $0x40] sm:$0x1]  ;;  %v76_v43 = vld [vmem:[#allocation4 + $0x50] sm:$0x1]  ;;  %v90_v49 = vrot.slane %v73_v38, 6  ;;  %307 = vxpose.xlu0.b32.start.end [1/1] (short) (narrow) %v305_v44, 16  ;;  %v233_v50 = vsel %vm97_vm3, %v232_v30, %v231_v45 }
  0x11   :  { %v77_v46 = vld [vmem:[#allocation4 + $0x60] sm:$0x1]  ;;  %v78_v47 = vld [vmem:[#allocation4 + $0x70] sm:$0x1]  ;;  %v93_v51 = vrot.slane %v74_v41, 5  ;;  %v96_v52 = vrot.slane %v75_v42, 4  ;;  %v235_v55 = vsel %vm100_vm4, %v234_v31, %v233_v50  ;;  %v89_v56 = vsel %vm88_vm0, %v87_v48, %v71_v32 }
  0x12   :  { %v99_v53 = vrot.slane %v76_v43, 3  ;;  %v342_v54 = vld [vmem:[#allocation4 + $0x4] sm:$0x1]  ;;  %v102_v57 = vrot.slane %v77_v46, 2  ;;  %v105_v58 = vrot.slane %v78_v47, 1  ;;  %v237_v61 = vsel %vm103_vm5, %v236_v35, %v235_v55 }
  0x13   :  { %v343_v59 = vld [vmem:[#allocation4 + $0x14] sm:$0x1]  ;;  %v344_v60 = vld [vmem:[#allocation4 + $0x24] sm:$0x1]  ;;  %v92_v62 = vsel %vm91_vm1, %v90_v49, %v89_v56  ;;  %v239_v2 = vsel %vm106_vm6, %v238_v36, %v237_v61  ;;  %v408_v12 = vld [vmem:[#allocation4 + $0x5] sm:$0x1] }
  0x14   :  { %v345_v63 = vld [vmem:[#allocation4 + $0x34] sm:$0x1]  ;;  %v346_v0 = vld [vmem:[#allocation4 + $0x44] sm:$0x1]  ;;  %v95_v3 = vsel %vm94_vm2, %v93_v51, %v92_v62  ;;  %v358_v6 = vrot.slane %v343_v59, 7  ;;  %v360_v7 = vrot.slane %v344_v60, 6 }
  0x15   :  { %v347_v1 = vld [vmem:[#allocation4 + $0x54] sm:$0x1]  ;;  %v348_v4 = vld [vmem:[#allocation4 + $0x64] sm:$0x1]  ;;  %241 = vxpose.xlu2.b32.start.end [1/1] (short) (narrow) %v239_v2, 16  ;;  %v98_v8 = vsel %vm97_vm3, %v96_v52, %v95_v3  ;;  %v362_v9 = vrot.slane %v345_v63, 5 }
  0x16   :  { %v349_v5 = vld [vmem:[#allocation4 + $0x74] sm:$0x1]  ;;  %v364_v10 = vrot.slane %v346_v0, 4  ;;  %v366_v11 = vrot.slane %v347_v1, 3  ;;  %v101_v13 = vsel %vm100_vm4, %v99_v53, %v98_v8  ;;  %v359_v14 = vsel %vm88_vm0, %v358_v6, %v342_v54  ;;  %v409_v17 = vld [vmem:[#allocation4 + $0x15] sm:$0x1] }
  0x17   :  { %v368_v15 = vrot.slane %v348_v4, 2  ;;  %v370_v16 = vrot.slane %v349_v5, 1  ;;  %v410_v18 = vld [vmem:[#allocation4 + $0x25] sm:$0x1]  ;;  %v104_v19 = vsel %vm103_vm5, %v102_v57, %v101_v13  ;;  %v361_v20 = vsel %vm91_vm1, %v360_v7, %v359_v14  ;;  %v411_v21 = vld [vmem:[#allocation4 + $0x35] sm:$0x1] }
  0x18   :  { %v412_v22 = vld [vmem:[#allocation4 + $0x45] sm:$0x1]  ;;  %v413_v23 = vld [vmem:[#allocation4 + $0x55] sm:$0x1]  ;;  %v107_v24 = vsel %vm106_vm6, %v105_v58, %v104_v19  ;;  %v363_v25 = vsel %vm94_vm2, %v362_v9, %v361_v20  ;;  %v424_v28 = vrot.slane %v409_v17, 7  ;;  %v426_v29 = vrot.slane %v410_v18, 6 }
  0x19   :  { %v414_v26 = vld [vmem:[#allocation4 + $0x65] sm:$0x1]  ;;  %v415_v27 = vld [vmem:[#allocation4 + $0x75] sm:$0x1]  ;;  %109 = vxpose.xlu1.b32.start.end [1/1] (short) (narrow) %v107_v24, 16  ;;  %v365_v30 = vsel %vm97_vm3, %v364_v10, %v363_v25  ;;  %v428_v31 = vrot.slane %v411_v21, 5 }
  0x1a   :  { %v430_v32 = vrot.slane %v412_v22, 4  ;;  %v432_v33 = vrot.slane %v413_v23, 3  ;;  %v144_v34 = vld [vmem:[#allocation4 + $0x1] sm:$0x1]  ;;  %v367_v35 = vsel %vm100_vm4, %v366_v11, %v365_v30  ;;  %v425_v36 = vsel %vm88_vm0, %v424_v28, %v408_v12  ;;  %v145_v39 = vld [vmem:[#allocation4 + $0x11] sm:$0x1] }
  0x1b   :  { %v434_v37 = vrot.slane %v414_v26, 2  ;;  %v436_v38 = vrot.slane %v415_v27, 1  ;;  %v146_v40 = vld [vmem:[#allocation4 + $0x21] sm:$0x1]  ;;  %v369_v41 = vsel %vm103_vm5, %v368_v15, %v367_v35  ;;  %v427_v42 = vsel %vm91_vm1, %v426_v29, %v425_v36  ;;  %v147_v43 = vld [vmem:[#allocation4 + $0x31] sm:$0x1] }
  0x1c   :  { %v148_v44 = vld [vmem:[#allocation4 + $0x41] sm:$0x1]  ;;  %v149_v45 = vld [vmem:[#allocation4 + $0x51] sm:$0x1]  ;;  %v371_v46 = vsel %vm106_vm6, %v370_v16, %v369_v41  ;;  %v429_v47 = vsel %vm94_vm2, %v428_v31, %v427_v42  ;;  %v160_v50 = vrot.slane %v145_v39, 7  ;;  %v162_v51 = vrot.slane %v146_v40, 6 }
  0x1d   :  { %v150_v48 = vld [vmem:[#allocation4 + $0x61] sm:$0x1]  ;;  %v151_v49 = vld [vmem:[#allocation4 + $0x71] sm:$0x1]  ;;  %v431_v52 = vsel %vm97_vm3, %v430_v32, %v429_v47  ;;  %v164_v53 = vrot.slane %v147_v43, 5  ;;  %v166_v54 = vrot.slane %v148_v44, 4 }
  0x1e   :  { %v168_v55 = vrot.slane %v149_v45, 3  ;;  %v474_v56 = vld [vmem:[#allocation4 + $0x6] sm:$0x1]  ;;  %v433_v57 = vsel %vm100_vm4, %v432_v33, %v431_v52  ;;  %v161_v58 = vsel %vm88_vm0, %v160_v50, %v144_v34  ;;  %v170_v59 = vrot.slane %v150_v48, 2  ;;  %v475_v61 = vld [vmem:[#allocation4 + $0x16] sm:$0x1] }
  0x1f   :  { %v172_v60 = vrot.slane %v151_v49, 1  ;;  %v476_v62 = vld [vmem:[#allocation4 + $0x26] sm:$0x1]  ;;  %v435_v63 = vsel %vm103_vm5, %v434_v37, %v433_v57  ;;  %v163_v0 = vsel %vm91_vm1, %v162_v51, %v161_v58  ;;  %v477_v1 = vld [vmem:[#allocation4 + $0x36] sm:$0x1]  ;;  %v490_v8 = vrot.slane %v475_v61, 7 }
  0x20   :  { %v478_v2 = vld [vmem:[#allocation4 + $0x46] sm:$0x1]  ;;  %v479_v3 = vld [vmem:[#allocation4 + $0x56] sm:$0x1]  ;;  %v437_v4 = vsel %vm106_vm6, %v436_v38, %v435_v63  ;;  %v165_v5 = vsel %vm94_vm2, %v164_v53, %v163_v0  ;;  %v492_v9 = vrot.slane %v476_v62, 6  ;;  %373 = vxpose.xlu0.b32.start.end [1/1] (short) (narrow) %v371_v46, 16 }
  0x21   :  { %v480_v6 = vld [vmem:[#allocation4 + $0x66] sm:$0x1]  ;;  %v2524_v7 = vld [vmem:[#allocation4 + $0x76] sm:$0x1]  ;;  %v167_v10 = vsel %vm97_vm3, %v166_v54, %v165_v5  ;;  %v494_v11 = vrot.slane %v477_v1, 5  ;;  %v496_v12 = vrot.slane %v478_v2, 4  ;;  %v491_v16 = vsel %vm88_vm0, %v490_v8, %v474_v56 }
  0x22   :  { %v498_v13 = vrot.slane %v479_v3, 3  ;;  %v606_v14 = vld [vmem:[#allocation4 + $0x8] sm:$0x1]  ;;  %v169_v15 = vsel %vm100_vm4, %v168_v55, %v167_v10  ;;  %v500_v17 = vrot.slane %v480_v6, 2  ;;  %v502_v18 = vrot.slane %v2524_v7, 1 }
  0x23   :  { %v607_v19 = vld [vmem:[#allocation4 + $0x18] sm:$0x1]  ;;  %v608_v20 = vld [vmem:[#allocation4 + $0x28] sm:$0x1]  ;;  %v171_v21 = vsel %vm103_vm5, %v170_v59, %v169_v15  ;;  %v493_v22 = vsel %vm91_vm1, %v492_v9, %v491_v16  ;;  %v540_v35 = vld [vmem:[#allocation4 + $0x7] sm:$0x1] }
  0x24   :  { %v609_v23 = vld [vmem:[#allocation4 + $0x38] sm:$0x1]  ;;  %v610_v24 = vld [vmem:[#allocation4 + $0x48] sm:$0x1]  ;;  %v495_v26 = vsel %vm94_vm2, %v494_v11, %v493_v22  ;;  %v622_v29 = vrot.slane %v607_v19, 7  ;;  %v624_v30 = vrot.slane %v608_v20, 6  ;;  %v173_v36 = vsel %vm106_vm6, %v172_v60, %v171_v21 }
  0x25   :  { %v611_v25 = vld [vmem:[#allocation4 + $0x58] sm:$0x1]  ;;  %v612_v27 = vld [vmem:[#allocation4 + $0x68] sm:$0x1]  ;;  %439 = vxpose.xlu2.b32.start.end [1/1] (short) (narrow) %v437_v4, 16  ;;  %v497_v31 = vsel %vm97_vm3, %v496_v12, %v495_v26  ;;  %v626_v32 = vrot.slane %v609_v23, 5 }
  0x26   :  { %v2533_v28 = vld [vmem:[#allocation4 + $0x78] sm:$0x1]  ;;  %v628_v33 = vrot.slane %v610_v24, 4  ;;  %v630_v34 = vrot.slane %v611_v25, 3  ;;  %v623_v37 = vsel %vm88_vm0, %v622_v29, %v606_v14  ;;  %v632_v38 = vrot.slane %v612_v27, 2 }
  0x27   :  { %v634_v39 = vrot.slane %v2533_v28, 1  ;;  %v541_v40 = vld [vmem:[#allocation4 + $0x17] sm:$0x1]  ;;  %v542_v41 = vld [vmem:[#allocation4 + $0x27] sm:$0x1]  ;;  %v625_v42 = vsel %vm91_vm1, %v624_v30, %v623_v37  ;;  %v499_v46 = vsel %vm100_vm4, %v498_v13, %v497_v31 }
  0x28   :  { %v543_v43 = vld [vmem:[#allocation4 + $0x37] sm:$0x1]  ;;  %v544_v44 = vld [vmem:[#allocation4 + $0x47] sm:$0x1]  ;;  %v627_v47 = vsel %vm94_vm2, %v626_v32, %v625_v42  ;;  %v556_v50 = vrot.slane %v541_v40, 7  ;;  %v558_v51 = vrot.slane %v542_v41, 6  ;;  %v501_v62 = vsel %vm103_vm5, %v500_v17, %v499_v46 }
  0x29   :  { %v545_v45 = vld [vmem:[#allocation4 + $0x57] sm:$0x1]  ;;  %v546_v48 = vld [vmem:[#allocation4 + $0x67] sm:$0x1]  ;;  %175 = vxpose.xlu1.b32.start.end [1/1] (short) (narrow) %v173_v36, 16  ;;  %v629_v52 = vsel %vm97_vm3, %v628_v33, %v627_v47  ;;  %v560_v53 = vrot.slane %v543_v43, 5  ;;  %v503_v15 = vsel %vm106_vm6, %v502_v18, %v501_v62 }
  0x2a   :  { %v2542_v49 = vld [vmem:[#allocation4 + $0x77] sm:$0x1]  ;;  %v562_v54 = vrot.slane %v544_v44, 4  ;;  %v564_v55 = vrot.slane %v545_v45, 3  ;;  %v672_v56 = vld [vmem:[#allocation4 + $0x9] sm:$0x1]  ;;  %v557_v57 = vsel %vm88_vm0, %v556_v50, %v540_v35  ;;  %v631_v3 = vsel %vm100_vm4, %v630_v34, %v629_v52 }
  0x2b   :  { %v566_v58 = vrot.slane %v546_v48, 2  ;;  %v568_v59 = vrot.slane %v2542_v49, 1  ;;  %v673_v60 = vld [vmem:[#allocation4 + $0x19] sm:$0x1]  ;;  %v674_v61 = vld [vmem:[#allocation4 + $0x29] sm:$0x1]  ;;  %v559_v63 = vsel %vm91_vm1, %v558_v51, %v557_v57  ;;  %v633_v22 = vsel %vm103_vm5, %v632_v38, %v631_v3 }
  0x2c   :  { %v675_v0 = vld [vmem:[#allocation4 + $0x39] sm:$0x1]  ;;  %v676_v1 = vld [vmem:[#allocation4 + $0x49] sm:$0x1]  ;;  %v561_v4 = vsel %vm94_vm2, %v560_v53, %v559_v63  ;;  %v688_v8 = vrot.slane %v673_v60, 7  ;;  %v690_v9 = vrot.slane %v674_v61, 6  ;;  %v635_v37 = vsel %vm106_vm6, %v634_v39, %v633_v22 }
  0x2d   :  { %v677_v2 = vld [vmem:[#allocation4 + $0x59] sm:$0x1]  ;;  %v2551_v5 = vld [vmem:[#allocation4 + $0x69] sm:$0x1]  ;;  %v563_v10 = vsel %vm97_vm3, %v562_v54, %v561_v4  ;;  %v692_v11 = vrot.slane %v675_v0, 5  ;;  %v694_v12 = vrot.slane %v676_v1, 4 }
  0x2e   :  { %v2553_v6 = vld [vmem:[#allocation4 + $0x79] sm:$0x1]  ;;  %v696_v13 = vrot.slane %v677_v2, 3  ;;  %v804_v14 = vld [vmem:[#allocation4 + $0xb] sm:$0x1]  ;;  %v689_v16 = vsel %vm88_vm0, %v688_v8, %v672_v56  ;;  %v698_v17 = vrot.slane %v2551_v5, 2  ;;  %v565_v27 = vsel %vm100_vm4, %v564_v55, %v563_v10 }
  0x2f   :  { %v700_v19 = vrot.slane %v2553_v6, 1  ;;  %v805_v20 = vld [vmem:[#allocation4 + $0x1b] sm:$0x1]  ;;  %v806_v21 = vld [vmem:[#allocation4 + $0x2b] sm:$0x1]  ;;  %v691_v23 = vsel %vm91_vm1, %v690_v9, %v689_v16  ;;  %v567_v44 = vsel %vm103_vm5, %v566_v58, %v565_v27 }
  0x30   :  { %v807_v24 = vld [vmem:[#allocation4 + $0x3b] sm:$0x1]  ;;  %v808_v25 = vld [vmem:[#allocation4 + $0x4b] sm:$0x1]  ;;  %v693_v7 = vsel %vm94_vm2, %v692_v11, %v691_v23  ;;  %v820_v30 = vrot.slane %v805_v20, 7  ;;  %v822_v31 = vrot.slane %v806_v21, 6  ;;  %v569_v60 = vsel %vm106_vm6, %v568_v59, %v567_v44 }
  0x31   :  { %v809_v26 = vld [vmem:[#allocation4 + $0x5b] sm:$0x1]  ;;  %v2566_v18 = vld [vmem:[#allocation4 + $0x6b] sm:$0x1]  ;;  %505 = vxpose.xlu0.b32.start.end [1/1] (short) (narrow) %v503_v15, 16  ;;  %v695_v32 = vsel %vm97_vm3, %v694_v12, %v693_v7  ;;  %v824_v33 = vrot.slane %v807_v24, 5 }
  0x32   :  { %v2568_v29 = vld [vmem:[#allocation4 + $0x7b] sm:$0x1]  ;;  %v826_v34 = vrot.slane %v808_v25, 4  ;;  %v828_v35 = vrot.slane %v809_v26, 3  ;;  %v738_v36 = vld [vmem:[#allocation4 + $0xa] sm:$0x1]  ;;  %v821_v38 = vsel %vm88_vm0, %v820_v30, %v804_v14  ;;  %v697_v50 = vsel %vm100_vm4, %v696_v13, %v695_v32 }
  0x33   :  { %v830_v40 = vrot.slane %v2566_v18, 2  ;;  %v832_v41 = vrot.slane %v2568_v29, 1  ;;  %v739_v42 = vld [vmem:[#allocation4 + $0x1a] sm:$0x1]  ;;  %v740_v43 = vld [vmem:[#allocation4 + $0x2a] sm:$0x1]  ;;  %v823_v45 = vsel %vm91_vm1, %v822_v31, %v821_v38  ;;  %v699_v2 = vsel %vm103_vm5, %v698_v17, %v697_v50 }
  0x34   :  { %v741_v46 = vld [vmem:[#allocation4 + $0x3a] sm:$0x1]  ;;  %v742_v47 = vld [vmem:[#allocation4 + $0x4a] sm:$0x1]  ;;  %v825_v28 = vsel %vm94_vm2, %v824_v33, %v823_v45  ;;  %v754_v52 = vrot.slane %v739_v42, 7  ;;  %v756_v53 = vrot.slane %v740_v43, 6  ;;  %v701_v25 = vsel %vm106_vm6, %v700_v19, %v699_v2 }
  0x35   :  { %v743_v48 = vld [vmem:[#allocation4 + $0x5a] sm:$0x1]  ;;  %v2581_v39 = vld [vmem:[#allocation4 + $0x6a] sm:$0x1]  ;;  %637 = vxpose.xlu2.b32.start.end [1/1] (short) (narrow) %v635_v37, 16  ;;  %v827_v54 = vsel %vm97_vm3, %v826_v34, %v825_v28  ;;  %v758_v55 = vrot.slane %v741_v46, 5 }
  0x36   :  { %v2583_v51 = vld [vmem:[#allocation4 + $0x7a] sm:$0x1]  ;;  %v760_v56 = vrot.slane %v742_v47, 4  ;;  %v762_v57 = vrot.slane %v743_v48, 3  ;;  %v870_v58 = vld [vmem:[#allocation4 + $0xc] sm:$0x1]  ;;  %v755_v61 = vsel %vm88_vm0, %v754_v52, %v738_v36  ;;  %v829_v9 = vsel %vm100_vm4, %v828_v35, %v827_v54 }
  0x37   :  { %v764_v62 = vrot.slane %v2581_v39, 2  ;;  %v766_v63 = vrot.slane %v2583_v51, 1  ;;  %v871_v0 = vld [vmem:[#allocation4 + $0x1c] sm:$0x1]  ;;  %v872_v1 = vld [vmem:[#allocation4 + $0x2c] sm:$0x1]  ;;  %v757_v3 = vsel %vm91_vm1, %v756_v53, %v755_v61  ;;  %v831_v26 = vsel %vm103_vm5, %v830_v40, %v829_v9 }
  0x38   :  { %v873_v4 = vld [vmem:[#allocation4 + $0x3c] sm:$0x1]  ;;  %v874_v5 = vld [vmem:[#allocation4 + $0x4c] sm:$0x1]  ;;  %v759_v49 = vsel %vm94_vm2, %v758_v55, %v757_v3  ;;  %v886_v11 = vrot.slane %v871_v0, 7  ;;  %v888_v12 = vrot.slane %v872_v1, 6  ;;  %v833_v48 = vsel %vm106_vm6, %v832_v41, %v831_v26 }
  0x39   :  { %v875_v8 = vld [vmem:[#allocation4 + $0x5c] sm:$0x1]  ;;  %v876_v59 = vld [vmem:[#allocation4 + $0x6c] sm:$0x1]  ;;  %571 = vxpose.xlu1.b32.start.end [1/1] (short) (narrow) %v569_v60, 16  ;;  %v761_v13 = vsel %vm97_vm3, %v760_v56, %v759_v49  ;;  %v890_v14 = vrot.slane %v873_v4, 5 }
  0x3a   :  { %v877_v10 = vld [vmem:[#allocation4 + $0x7c] sm:$0x1]  ;;  %v892_v15 = vrot.slane %v874_v5, 4  ;;  %v894_v16 = vrot.slane %v875_v8, 3  ;;  %v1002_v17 = vld [vmem:[#allocation4 + $0xe] sm:$0x1]  ;;  %v887_v20 = vsel %vm88_vm0, %v886_v11, %v870_v58  ;;  %v763_v31 = vsel %vm100_vm4, %v762_v57, %v761_v13 }
  0x3b   :  { %v896_v21 = vrot.slane %v876_v59, 2  ;;  %v898_v22 = vrot.slane %v877_v10, 1  ;;  %v1003_v23 = vld [vmem:[#allocation4 + $0x1e] sm:$0x1]  ;;  %v1004_v24 = vld [vmem:[#allocation4 + $0x2e] sm:$0x1]  ;;  %v889_v27 = vsel %vm91_vm1, %v888_v12, %v887_v20  ;;  %v765_v50 = vsel %vm103_vm5, %v764_v62, %v763_v31 }
  0x3c   :  { %v1005_v7 = vld [vmem:[#allocation4 + $0x3e] sm:$0x1]  ;;  %v1006_v18 = vld [vmem:[#allocation4 + $0x4e] sm:$0x1]  ;;  %v891_v32 = vsel %vm94_vm2, %v890_v14, %v889_v27  ;;  %v1018_v35 = vrot.slane %v1003_v23, 7  ;;  %v1020_v36 = vrot.slane %v1004_v24, 6  ;;  %v767_v20 = vsel %vm106_vm6, %v766_v63, %v765_v50 }
  0x3d   :  { %v1007_v30 = vld [vmem:[#allocation4 + $0x5e] sm:$0x1]  ;;  %v1008_v33 = vld [vmem:[#allocation4 + $0x6e] sm:$0x1]  ;;  %v893_v37 = vsel %vm97_vm3, %v892_v15, %v891_v32  ;;  %v1022_v6 = vrot.slane %v1005_v7, 5  ;;  %v1024_v38 = vrot.slane %v1006_v18, 4 }
  0x3e   :  { %v1009_v34 = vld [vmem:[#allocation4 + $0x7e] sm:$0x1]  ;;  %v1026_v19 = vrot.slane %v1007_v30, 3  ;;  %v936_v42 = vld [vmem:[#allocation4 + $0xd] sm:$0x1]  ;;  %v895_v40 = vsel %vm100_vm4, %v894_v16, %v893_v37  ;;  %v1019_v43 = vsel %vm88_vm0, %v1018_v35, %v1002_v17  ;;  %v1028_v44 = vrot.slane %v1008_v33, 2 }
  0x3f   :  { %v1030_v45 = vrot.slane %v1009_v34, 1  ;;  %v937_v46 = vld [vmem:[#allocation4 + $0x1d] sm:$0x1]  ;;  %v938_v47 = vld [vmem:[#allocation4 + $0x2d] sm:$0x1]  ;;  %v897_v28 = vsel %vm103_vm5, %v896_v21, %v895_v40  ;;  %v1021_v39 = vsel %vm91_vm1, %v1020_v36, %v1019_v43  ;;  %v2472_v32 = vmov 0.0  }
  0x40   :  { %v939_v52 = vld [vmem:[#allocation4 + $0x3d] sm:$0x1]  ;;  %v940_v53 = vld [vmem:[#allocation4 + $0x4d] sm:$0x1]  ;;  %v899_v55 = vsel %vm106_vm6, %v898_v22, %v897_v28  ;;  %v1023_v56 = vsel %vm94_vm2, %v1022_v6, %v1021_v39  ;;  %v952_v60 = vrot.slane %v937_v46, 7  ;;  %v954_v61 = vrot.slane %v938_v47, 6 }
  0x41   :  { %v941_v54 = vld [vmem:[#allocation4 + $0x5d] sm:$0x1]  ;;  %v942_v57 = vld [vmem:[#allocation4 + $0x6d] sm:$0x1]  ;;  %703 = vxpose.xlu0.b32.start.end [1/1] (short) (narrow) %v701_v25, 16  ;;  %v1025_v29 = vsel %vm97_vm3, %v1024_v38, %v1023_v56  ;;  %v956_v41 = vrot.slane %v939_v52, 5 }
  0x42   :  { %v943_v58 = vld [vmem:[#allocation4 + $0x7d] sm:$0x1]  ;;  %v958_v62 = vrot.slane %v940_v53, 4  ;;  %v960_v0 = vrot.slane %v941_v54, 3  ;;  %v1068_v1 = vld [vmem:[#allocation4 + $0xf] sm:$0x1]  ;;  %v1027_v2 = vsel %vm100_vm4, %v1026_v19, %v1025_v29  ;;  %v953_v3 = vsel %vm88_vm0, %v952_v60, %v936_v42 }
  0x43   :  { %v962_v4 = vrot.slane %v942_v57, 2  ;;  %v964_v5 = vrot.slane %v943_v58, 1  ;;  %v1069_v8 = vld [vmem:[#allocation4 + $0x1f] sm:$0x1]  ;;  %v1070_v9 = vld [vmem:[#allocation4 + $0x2f] sm:$0x1]  ;;  %v1029_v49 = vsel %vm103_vm5, %v1028_v44, %v1027_v2  ;;  %v955_v59 = vsel %vm91_vm1, %v954_v61, %v953_v3 }
  0x44   :  { %v1071_v10 = vld [vmem:[#allocation4 + $0x3f] sm:$0x1]  ;;  %v1072_v11 = vld [vmem:[#allocation4 + $0x4f] sm:$0x1]  ;;  %v1031_v13 = vsel %vm106_vm6, %v1030_v45, %v1029_v49  ;;  %v957_v14 = vsel %vm94_vm2, %v956_v41, %v955_v59  ;;  %v1084_v16 = vrot.slane %v1069_v8, 7  ;;  %v1086_v17 = vrot.slane %v1070_v9, 6 }
  0x45   :  { %v1073_v12 = vld [vmem:[#allocation4 + $0x5f] sm:$0x1]  ;;  %v1074_v15 = vld [vmem:[#allocation4 + $0x6f] sm:$0x1]  ;;  %835 = vxpose.xlu2.b32.start.end [1/1] (short) (narrow) %v833_v48, 16  ;;  %v959_v21 = vsel %vm97_vm3, %v958_v62, %v957_v14  ;;  %v1088_v23 = vrot.slane %v1071_v10, 5 }
  0x46   :  { %v1075_v22 = vld [vmem:[#allocation4 + $0x7f] sm:$0x1]  ;;  %v1090_v24 = vrot.slane %v1072_v11, 4  ;;  %v961_v25 = vsel %vm100_vm4, %v960_v0, %v959_v21  ;;  %v1085_v26 = vsel %vm88_vm0, %v1084_v16, %v1068_v1  ;;  %v1092_v27 = vrot.slane %v1073_v12, 3  ;;  %27 = vst.msk [vmem:[#allocation2 + $0x10] sm:$0xff] %vm24_vm7, %v2472_v32 }
  0x47   :  { %v1094_v7 = vrot.slane %v1074_v15, 2  ;;  %v963_v18 = vsel %vm103_vm5, %v962_v4, %v961_v25  ;;  %v1087_v30 = vsel %vm91_vm1, %v1086_v17, %v1085_v26  ;;  %v1096_v31 = vrot.slane %v1075_v22, 1  ;;  %25 = vst.msk [vmem:[#allocation2] sm:$0xff] %vm24_vm7, %v2472_v32 }
  0x48   :  { %v965_v51 = vsel %vm106_vm6, %v964_v5, %v963_v18  ;;  %v1089_v63 = vsel %vm94_vm2, %v1088_v23, %v1087_v30  ;;  %26 = vst.msk [vmem:[#allocation2 + $0x8] sm:$0xff] %vm24_vm7, %v2472_v32 }
  0x49   :  { %769 = vxpose.xlu1.b32.start.end [1/1] (short) (narrow) %v767_v20, 16  ;;  %v1091_v33 = vsel %vm97_vm3, %v1090_v24, %v1089_v63  ;;  %28 = vst.msk [vmem:[#allocation2 + $0x18] sm:$0xff] %vm24_vm7, %v2472_v32 }
  0x4a   :  { %v1093_v34 = vsel %vm100_vm4, %v1092_v27, %v1091_v33  ;;  %29 = vst.msk [vmem:[#allocation2 + $0x20] sm:$0xff] %vm24_vm7, %v2472_v32 }
  0x4b   :  { %v1095_v35 = vsel %vm103_vm5, %v1094_v7, %v1093_v34  ;;  %30 = vst.msk [vmem:[#allocation2 + $0x28] sm:$0xff] %vm24_vm7, %v2472_v32 }
  0x4c   :  { %v1097_v36 = vsel %vm106_vm6, %v1096_v31, %v1095_v35  ;;  %32 = vst.msk [vmem:[#allocation2 + $0x130] sm:$0xff] %vm24_vm7, %v2472_v32 }
  0x4d   :  { %33 = vst.msk [vmem:[#allocation2 + $0x138] sm:$0xff] %vm24_vm7, %v2472_v32  ;;  %v1359_v53 = vld [vmem:[#allocation2 + $0x10] sm:$0xff] }
  0x4e   :  { %34 = vst.msk [vmem:[#allocation2 + $0x140] sm:$0xff] %vm24_vm7, %v2472_v32  ;;  %v1198_v47 = vld [vmem:[#allocation2] sm:$0xff] }
  0x4f   :  { %35 = vst.msk [vmem:[#allocation2 + $0x148] sm:$0xff] %vm24_vm7, %v2472_v32  ;;  %v1199_v18 = vld [vmem:[#allocation2 + $0x8] sm:$0xff] }
  0x50   :  { %36 = vst.msk [vmem:[#allocation2 + $0x150] sm:$0xff] %vm24_vm7, %v2472_v32  ;;  %v1360_v31 = vld [vmem:[#allocation2 + $0x18] sm:$0xff] }
  0x51   :  { %901 = vxpose.xlu0.b32.start.end [1/1] (short) (narrow) %v899_v55, 16  ;;  %37 = vst.msk [vmem:[#allocation2 + $0x158] sm:$0xff] %vm24_vm7, %v2472_v32  ;;  %v1361_v50 = vld [vmem:[#allocation2 + $0x20] sm:$0xff] }
  0x52   :  { %39 = vst.msk [vmem:[#allocation3] sm:$0x7] %vm38_vm8, %v2472_v32  ;;  %v1362_v34 = vld [vmem:[#allocation2 + $0x28] sm:$0xff] }
  0x53   :  { %40 = vst.msk [vmem:[#allocation3 + $0x18] sm:$0x7] %vm38_vm8, %v2472_v32 }
  0x54   :  { %41 = vst.msk [vmem:[#allocation3 + $0x30] sm:$0x7] %vm38_vm8, %v2472_v32 }
  0x55   :  { %1033 = vxpose.xlu2.b32.start.end [1/1] (short) (narrow) %v1031_v13, 16  ;;  %42 = vst.msk [vmem:[#allocation3 + $0x48] sm:$0x7] %vm38_vm8, %v2472_v32 }
  0x56   :  { %43 = vst.msk [vmem:[#allocation3 + $0x60] sm:$0x7] %vm38_vm8, %v2472_v32 }
  0x57   :  { %44 = vst.msk [vmem:[#allocation3 + $0x78] sm:$0x7] %vm38_vm8, %v2472_v32 }
  0x58   :  { %45 = vst.msk [vmem:[#allocation3 + $0x90] sm:$0x7] %vm38_vm8, %v2472_v32 }
  0x59   :  { %967 = vxpose.xlu1.b32.start.end [1/1] (short) (narrow) %v965_v51, 16  ;;  %46 = vst.msk [vmem:[#allocation3 + $0xa8] sm:$0x7] %vm38_vm8, %v2472_v32 }
  0x5a   :  { %47 = vst.msk [vmem:[#allocation3 + $0xc0] sm:$0x7] %vm38_vm8, %v2472_v32 }
  0x5b   :  { %48 = vst.msk [vmem:[#allocation3 + $0xd8] sm:$0x7] %vm38_vm8, %v2472_v32 }
  0x5c   :  { %49 = vst.msk [vmem:[#allocation3 + $0xf0] sm:$0x7] %vm38_vm8, %v2472_v32 }
  0x5d   :  { %50 = vst.msk [vmem:[#allocation3 + $0x108] sm:$0x7] %vm38_vm8, %v2472_v32 }
  0x5e   :  { %51 = vst.msk [vmem:[#allocation3 + $0x120] sm:$0x7] %vm38_vm8, %v2472_v32 }
  0x5f   :  { %52 = vst.msk [vmem:[#allocation3 + $0x138] sm:$0x7] %vm38_vm8, %v2472_v32 }
  0x60   :  { %53 = vst.msk [vmem:[#allocation3 + $0x150] sm:$0x7] %vm38_vm8, %v2472_v32 }
  0x61   :  { %1099 = vxpose.xlu0.b32.start.end [1/1] (short) (narrow) %v1097_v36, 16  ;;  %54 = vst.msk [vmem:[#allocation3 + $0x168] sm:$0x7] %vm38_vm8, %v2472_v32 }
  0x62   :  { %55 = vst.msk [vmem:[#allocation3 + $0x13] sm:$0x7] %vm38_vm8, %v2472_v32 }
  0x63   :  { %56 = vst.msk [vmem:[#allocation3 + $0x2b] sm:$0x7] %vm38_vm8, %v2472_v32 }
  0x64   :  { %57 = vst.msk [vmem:[#allocation3 + $0x43] sm:$0x7] %vm38_vm8, %v2472_v32 }
  0x65   :  { %58 = vst.msk [vmem:[#allocation3 + $0x5b] sm:$0x7] %vm38_vm8, %v2472_v32 }
  0x66   :  { %59 = vst.msk [vmem:[#allocation3 + $0x73] sm:$0x7] %vm38_vm8, %v2472_v32 }
  0x67   :  { %60 = vst.msk [vmem:[#allocation3 + $0x8b] sm:$0x7] %vm38_vm8, %v2472_v32 }
  0x68   :  { %61 = vst.msk [vmem:[#allocation3 + $0xa3] sm:$0x7] %vm38_vm8, %v2472_v32 }
  0x69   :  { %62 = vst.msk [vmem:[#allocation3 + $0xbb] sm:$0x7] %vm38_vm8, %v2472_v32 }
  0x6a   :  { %63 = vst.msk [vmem:[#allocation3 + $0xd3] sm:$0x7] %vm38_vm8, %v2472_v32 }
  0x6b   :  { %64 = vst.msk [vmem:[#allocation3 + $0xeb] sm:$0x7] %vm38_vm8, %v2472_v32 }
  0x6c   :  { %65 = vst.msk [vmem:[#allocation3 + $0x103] sm:$0x7] %vm38_vm8, %v2472_v32 }
  0x6d   :  { %66 = vst.msk [vmem:[#allocation3 + $0x11b] sm:$0x7] %vm38_vm8, %v2472_v32 }
  0x6e   :  { %67 = vst.msk [vmem:[#allocation3 + $0x133] sm:$0x7] %vm38_vm8, %v2472_v32 }
  0x6f   :  { %68 = vst.msk [vmem:[#allocation3 + $0x14b] sm:$0x7] %vm38_vm8, %v2472_v32 }
  0x70   :  { %69 = vst.msk [vmem:[#allocation3 + $0x163] sm:$0x7] %vm38_vm8, %v2472_v32 }
  0x71   :  { %70 = vst.msk [vmem:[#allocation3 + $0x17b] sm:$0x7] %vm38_vm8, %v2472_v32 }
  0xae   :  { %v257_v37 = vpop.trf.xlu2 }
  0xaf   :  { %274 = vst.msk [vmem:[#allocation2 + $0x50] sm:$0xff] %vm24_vm7, %v257_v37 }
  0xb4   :  { %v323_v6 = vpop.trf.xlu0 }
  0xb5   :  { %340 = vst.msk [vmem:[#allocation2 + $0x60] sm:$0xff] %vm24_vm7, %v323_v6 }
  0xb6   :  { %v258_v38 = vpop.trf.xlu2  ;;  %v2706_v52 = vld [vmem:[#allocation2 + $0x50] sm:$0xff] }
  0xb7   :  { %275 = vst.msk [vmem:[#allocation2 + $0x58] sm:$0xff] %vm24_vm7, %v258_v38  ;;  %v1170_v56 = vmul.f32 0.39905027, %v2706_v52  ;;  %v1423_v60 = vadd.f32 %v1359_v53, %v2706_v52 }
  0xb9   :  { %v1455_v4 = vmul.f32 0.054005582, %v1423_v60 }
  0xbc   :  { %v324_v42 = vpop.trf.xlu0  ;;  %v2691_v46 = vld [vmem:[#allocation2 + $0x60] sm:$0xff] }
  0xbd   :  { %v125_v19 = vpop.trf.xlu1  ;;  %341 = vst.msk [vmem:[#allocation2 + $0x68] sm:$0xff] %vm24_vm7, %v324_v42  ;;  %v1262_v48 = vadd.f32 %v1198_v47, %v2691_v46  ;;  %v1425_v1 = vadd.f32 %v1361_v50, %v2691_v46 }
  0xbe   :  { %142 = vst.msk [vmem:[#allocation2 + $0x30] sm:$0xff] %vm24_vm7, %v125_v19  ;;  %v455_v40 = vpop.trf.xlu2  ;;  %v2759_v63 = vld [vmem:[#allocation2 + $0x58] sm:$0xff] }
  0xbf   :  { %472 = vst.msk [vmem:[#allocation2 + $0x80] sm:$0xff] %vm24_vm7, %v455_v40  ;;  %v1294_v57 = vmul.f32 0.004433048, %v1262_v48  ;;  %v1457_v15 = vmul.f32 0.054005582, %v1425_v1  ;;  %v1424_v36 = vadd.f32 %v1360_v31, %v2759_v63 }
  0xc0   :  { %v2782_v40 = vmul.f32 0.39905027, %v2691_v46 }
  0xc4   :  { %v389_v44 = vpop.trf.xlu0  ;;  %v2755_v7 = vld [vmem:[#allocation2 + $0x68] sm:$0xff] }
  0xc5   :  { %v126_v43 = vpop.trf.xlu1  ;;  %406 = vst.msk [vmem:[#allocation2 + $0x70] sm:$0xff] %vm24_vm7, %v389_v44  ;;  %v2708_v54 = vld [vmem:[#allocation2 + $0x30] sm:$0xff]  ;;  %v1263_v33 = vadd.f32 %v1199_v18, %v2755_v7  ;;  %v1426_v38 = vadd.f32 %v1362_v34, %v2755_v7  ;;  %v1171_v44 = vmul.f32 0.39905027, %v2759_v63 }
  0xc6   :  { %143 = vst.msk [vmem:[#allocation2 + $0x38] sm:$0xff] %vm24_vm7, %v126_v43  ;;  %v456_v45 = vpop.trf.xlu2  ;;  %v2699_v28 = vld [vmem:[#allocation2 + $0x80] sm:$0xff]  ;;  %v1166_v61 = vmul.f32 0.39905027, %v2708_v54  ;;  %v1586_v49 = vadd.f32 %v2706_v52, %v2708_v54 }
  0xc7   :  { %473 = vst.msk [vmem:[#allocation2 + $0x88] sm:$0xff] %vm24_vm7, %v456_v45  ;;  %v1266_v39 = vadd.f32 %v1361_v50, %v2699_v28  ;;  %v1592_v37 = vadd.f32 %v2699_v28, %v2691_v46  ;;  %v1295_v6 = vmul.f32 0.004433048, %v1263_v33  ;;  %v1456_v45 = vmul.f32 0.054005582, %v1424_v36 }
  0xc8   :  { %v1326_v5 = vadd.f32 %v1294_v57, %v1166_v61  ;;  %v1618_v22 = vmul.f32 0.24203622, %v1586_v49  ;;  %v2791_v48 = vmul.f32 0.39905027, %v2699_v28 }
  0xc9   :  { %v1298_v29 = vmul.f32 0.004433048, %v1266_v39 }
  0xca   :  { %v1487_v16 = vadd.f32 %v1455_v4, %v1326_v5 }
  0xcb   :  { %v1330_v8 = vadd.f32 %v1298_v29, %v1170_v56  ;;  %v1458_v56 = vmul.f32 0.054005582, %v1426_v38 }
  0xcc   :  { %v2714_v58 = vld [vmem:[#allocation2 + $0x70] sm:$0xff]  ;;  %v390_v3 = vpop.trf.xlu0 }
  0xcd   :  { %v191_v55 = vpop.trf.xlu1  ;;  %v1264_v41 = vadd.f32 %v1359_v53, %v2714_v58  ;;  %v1427_v62 = vadd.f32 %v2714_v58, %v2708_v54  ;;  %v2766_v35 = vld [vmem:[#allocation2 + $0x38] sm:$0xff]  ;;  %407 = vst.msk [vmem:[#allocation2 + $0x78] sm:$0xff] %vm24_vm7, %v390_v3  ;;  %v1590_v60 = vadd.f32 %v2714_v58, %v2706_v52  ;;  %v2811_v1 = vmul.f32 0.39905027, %v2714_v58 }
  0xce   :  { %208 = vst.msk [vmem:[#allocation2 + $0x40] sm:$0xff] %vm24_vm7, %v191_v55  ;;  %v653_v0 = vpop.trf.xlu2  ;;  %v1167_v19 = vmul.f32 0.39905027, %v2766_v35  ;;  %v2778_v42 = vld [vmem:[#allocation2 + $0x88] sm:$0xff]  ;;  %v1587_v47 = vadd.f32 %v2759_v63, %v2766_v35  ;;  %v2799_v55 = vmul.f32 0.24203622, %v1592_v37 }
  0xcf   :  { %v1459_v2 = vmul.f32 0.054005582, %v1427_v62  ;;  %v1296_v9 = vmul.f32 0.004433048, %v1264_v41  ;;  %670 = vst.msk [vmem:[#allocation2 + $0xb0] sm:$0xff] %vm24_vm7, %v653_v0  ;;  %v1267_v43 = vadd.f32 %v1362_v34, %v2778_v42  ;;  %v1593_v39 = vadd.f32 %v2778_v42, %v2755_v7 }
  0xd0   :  { %v1327_v57 = vadd.f32 %v1295_v6, %v1167_v19  ;;  %v2805_v29 = vmul.f32 0.39905027, %v2778_v42  ;;  %v1619_v0 = vmul.f32 0.24203622, %v1587_v47 }
  0xd1   :  { %v1491_v11 = vadd.f32 %v1459_v2, %v1330_v8  ;;  %v1299_v41 = vmul.f32 0.004433048, %v1267_v43  ;;  %v2814_v3 = vmul.f32 0.24203622, %v1593_v39 }
  0xd2   :  { %v1488_v8 = vadd.f32 %v1456_v45, %v1327_v57 }
  0xd4   :  { %v2816_v5 = vld [vmem:[#allocation2 + $0x78] sm:$0xff] }
  0xd5   :  { %v2736_v59 = vld [vmem:[#allocation2 + $0x40] sm:$0xff]  ;;  %v192_v10 = vpop.trf.xlu1  ;;  %v521_v30 = vpop.trf.xlu0  ;;  %v2851_v37 = vmul.f32 0.39905027, %v2816_v5 }
  0xd6   :  { %v1168_v12 = vmul.f32 0.39905027, %v2736_v59  ;;  %v1584_v13 = vadd.f32 %v1361_v50, %v2736_v59  ;;  %v1588_v14 = vadd.f32 %v2691_v46, %v2736_v59  ;;  %v654_v26 = vpop.trf.xlu2  ;;  %209 = vst.msk [vmem:[#allocation2 + $0x48] sm:$0xff] %vm24_vm7, %v192_v10  ;;  %v2794_v50 = vmul.f32 0.39905027, %v2755_v7  ;;  %v2821_v10 = vld [vmem:[#allocation2 + $0xb0] sm:$0xff] }
  0xd7   :  { %671 = vst.msk [vmem:[#allocation2 + $0xb8] sm:$0xff] %vm24_vm7, %v654_v26  ;;  %v1429_v62 = vadd.f32 %v2699_v28, %v2736_v59  ;;  %v1435_v26 = vadd.f32 %v2821_v10, %v2714_v58  ;;  %v2848_v36 = vmul.f32 0.39905027, %v2821_v10 }
  0xd8   :  { %v1328_v17 = vadd.f32 %v1296_v9, %v1168_v12  ;;  %v1616_v20 = vmul.f32 0.24203622, %v1584_v13  ;;  %v1620_v21 = vmul.f32 0.24203622, %v1588_v14  ;;  %538 = vst.msk [vmem:[#allocation2 + $0x90] sm:$0xff] %vm24_vm7, %v521_v30  ;;  %v1428_v12 = vadd.f32 %v2816_v5, %v2766_v35 }
  0xd9   :  { %v2819_v9 = vmul.f32 0.24203622, %v1590_v60  ;;  %3513 = vst [vmem:[#allocation7_spill] sm:$0xff] %v2821_v10  ;;  %v1331_v14 = vadd.f32 %v1299_v41, %v1171_v44 }
  0xda   :  { %v1489_v23 = vadd.f32 %v1457_v15, %v1328_v17  ;;  %v1648_v24 = vadd.f32 %v1616_v20, %v1487_v16  ;;  %v1652_v25 = vadd.f32 %v1620_v21, %v1491_v11  ;;  %v1265_v11 = vadd.f32 %v1360_v31, %v2816_v5 }
  0xdb   :  { %v1461_v15 = vmul.f32 0.054005582, %v1429_v62  ;;  %v1591_v31 = vadd.f32 %v2816_v5, %v2759_v63 }
  0xdc   :  { %v1650_v27 = vadd.f32 %v1618_v22, %v1489_v23  ;;  %1680 = vst.msk [vmem:[#allocation3 + $0x3] sm:$0xff] %vm24_vm7, %v1648_v24  ;;  %v1297_v21 = vmul.f32 0.004433048, %v1265_v11  ;;  %v1460_v22 = vmul.f32 0.054005582, %v1428_v12 }
  0xdd   :  { %1684 = vst.msk [vmem:[#allocation3 + $0x33] sm:$0xff] %vm24_vm7, %v1652_v25  ;;  %v587_v51 = vpop.trf.xlu1  ;;  %v522_v53 = vpop.trf.xlu0  ;;  %v2826_v13 = vld [vmem:[#allocation2 + $0x48] sm:$0xff]  ;;  %v1272_v25 = vadd.f32 %v2821_v10, %v2706_v52  ;;  %v2864_v60 = vmul.f32 0.24203622, %v1591_v31 }
  0xde   :  { %1682 = vst.msk [vmem:[#allocation3 + $0x1b] sm:$0xff] %vm24_vm7, %v1650_v27  ;;  %v851_v32 = vpop.trf.xlu2  ;;  %v1169_v17 = vmul.f32 0.39905027, %v2826_v13  ;;  %v1585_v23 = vadd.f32 %v1362_v34, %v2826_v13  ;;  %v1589_v27 = vadd.f32 %v2755_v7, %v2826_v13  ;;  %v1430_v38 = vadd.f32 %v2778_v42, %v2826_v13 }
  0xdf   :  { %604 = vst.msk [vmem:[#allocation2 + $0xa0] sm:$0xff] %vm24_vm7, %v587_v51  ;;  %v2842_v18 = vld [vmem:[#allocation2 + $0x90] sm:$0xff]  ;;  %v1492_v51 = vadd.f32 %v1460_v22, %v1331_v14  ;;  %v1304_v39 = vmul.f32 0.004433048, %v1272_v25 }
  0xe0   :  { %868 = vst.msk [vmem:[#allocation2 + $0xe0] sm:$0xff] %vm24_vm7, %v851_v32  ;;  %v1329_v33 = vadd.f32 %v1297_v21, %v1169_v17  ;;  %v1617_v34 = vmul.f32 0.24203622, %v1585_v23  ;;  %v1621_v6 = vmul.f32 0.24203622, %v1589_v27  ;;  %v2855_v32 = vld [vmem:[#allocation2 + $0xb8] sm:$0xff]  ;;  %v1268_v44 = vadd.f32 %v2842_v18, %v2708_v54 }
  0xe1   :  { %539 = vst.msk [vmem:[#allocation2 + $0x98] sm:$0xff] %vm24_vm7, %v522_v53  ;;  %v2861_v53 = vmul.f32 0.054005582, %v1435_v26  ;;  %v1273_v62 = vadd.f32 %v2855_v32, %v2759_v63  ;;  %v1594_v11 = vadd.f32 %v2842_v18, %v2714_v58  ;;  %v1336_v14 = vadd.f32 %v1304_v39, %v2791_v48  ;;  %v2896_v27 = vld [vmem:[#allocation2 + $0x140] sm:$0xff] }
  0xe2   :  { %3514 = vst [vmem:[#allocation8_spill] sm:$0xff] %v2842_v18  ;;  %v1490_v19 = vadd.f32 %v1458_v56, %v1329_v33  ;;  %v1649_v43 = vadd.f32 %v1617_v34, %v1488_v8  ;;  %v1653_v57 = vadd.f32 %v1621_v6, %v1492_v51  ;;  %v1300_v56 = vmul.f32 0.004433048, %v1268_v44 }
  0xe3   :  { %v1712_v2 = vld [vmem:[#allocation3 + $0x3] sm:$0xff]  ;;  %v2886_v17 = vmul.f32 0.39905027, %v2855_v32  ;;  %v2890_v22 = vmul.f32 0.39905027, %v2842_v18  ;;  %3518 = vst [vmem:[#allocation12_spill] sm:$0xff] %v2896_v27 }
  0xe4   :  { %v1716_v4 = vld [vmem:[#allocation3 + $0x33] sm:$0xff]  ;;  %v2828_v16 = vmul.f32 0.39905027, %v1712_v2  ;;  %1681 = vst.msk [vmem:[#allocation3 + $0xb] sm:$0xff] %vm24_vm7, %v1649_v43  ;;  %v1436_v2 = vadd.f32 %v2855_v32, %v2816_v5  ;;  %v1626_v34 = vmul.f32 0.24203622, %v1594_v11 }
  0xe5   :  { %v588_v61 = vpop.trf.xlu1  ;;  %v1714_v49 = vld [vmem:[#allocation3 + $0x1b] sm:$0xff]  ;;  %v2831_v20 = vmul.f32 0.39905027, %v1716_v4  ;;  %v719_v47 = vpop.trf.xlu0  ;;  %1685 = vst.msk [vmem:[#allocation3 + $0x3b] sm:$0xff] %vm24_vm7, %v1653_v57  ;;  %v1431_v4 = vadd.f32 %v2842_v18, %v2706_v52 }
  0xe6   :  { %605 = vst.msk [vmem:[#allocation2 + $0xa8] sm:$0xff] %vm24_vm7, %v588_v61  ;;  %v2834_v24 = vmul.f32 0.39905027, %v1714_v49  ;;  %v852_v30 = vpop.trf.xlu2  ;;  %v2859_v45 = vld [vmem:[#allocation2 + $0xa0] sm:$0xff]  ;;  %v1651_v61 = vadd.f32 %v1619_v0, %v1490_v19  ;;  %v2876_v49 = vmul.f32 0.054005582, %v1430_v38  ;;  %v1332_v0 = vadd.f32 %v1300_v56, %v2782_v40 }
  0xe7   :  { %869 = vst.msk [vmem:[#allocation2 + $0xe8] sm:$0xff] %vm24_vm7, %v852_v30  ;;  %v1270_v8 = vadd.f32 %v2859_v45, %v2736_v59  ;;  %v1433_v12 = vadd.f32 %v2859_v45, %v2691_v46  ;;  %v1598_v40 = vadd.f32 %v2821_v10, %v2842_v18  ;;  %v2894_v26 = vld [vmem:[#allocation2 + $0xe0] sm:$0xff]  ;;  %v2898_v30 = vmul.f32 0.004433048, %v1273_v62  ;;  %v1778_v39 = vld [vmem:[#allocation3 + $0x18] sm:$0xff] }
  0xe8   :  { %3515 = vst [vmem:[#allocation9_spill] sm:$0xff] %v2859_v45  ;;  %v1493_v23 = vadd.f32 %v1461_v15, %v1332_v0  ;;  %v2900_v48 = vmul.f32 0.054005582, %v1436_v2  ;;  %v1463_v51 = vmul.f32 0.054005582, %v1431_v4  ;;  %v1596_v38 = vadd.f32 %v2859_v45, %v2699_v28  ;;  %v1776_v62 = vld [vmem:[#allocation3] sm:$0xff] }
  0xe9   :  { %736 = vst.msk [vmem:[#allocation2 + $0xc0] sm:$0xff] %vm24_vm7, %v719_v47  ;;  %v1302_v21 = vmul.f32 0.004433048, %v1270_v8  ;;  %v1465_v25 = vmul.f32 0.054005582, %v1433_v12  ;;  %v1278_v47 = vadd.f32 %v2894_v26, %v2699_v28  ;;  %v2100_v18 = vld [vmem:[#allocation3 + $0x32] sm:$0xff] }
  0xea   :  { %1683 = vst.msk [vmem:[#allocation3 + $0x23] sm:$0xff] %vm24_vm7, %v1651_v61  ;;  %v1654_v6 = vadd.f32 %v2819_v9, %v1493_v23  ;;  %v2908_v43 = vmul.f32 0.39905027, %v2859_v45  ;;  %v2914_v61 = vmul.f32 0.24203622, %v1598_v40 }
  0xeb   :  { %3516 = vst [vmem:[#allocation10_spill] sm:$0xff] %v2886_v17  ;;  %v1334_v31 = vadd.f32 %v1302_v21, %v2811_v1  ;;  %v1497_v15 = vadd.f32 %v1465_v25, %v1336_v14  ;;  %v1777_v19 = vld [vmem:[#allocation3 + $0x8] sm:$0xff]  ;;  %v1290_v1 = vadd.f32 %v2896_v27, %v2894_v26  ;;  %v2919_v12 = vmul.f32 0.39905027, %v2894_v26  ;;  %v1780_v14 = vld [vmem:[#allocation3 + $0x30] sm:$0xff]  ;;  %v1938_v27 = vld [vmem:[#allocation3 + $0x19] sm:$0xff] }
  0xec   :  { %3517 = vst [vmem:[#allocation11_spill] sm:$0xff] %v2894_v26  ;;  %v1713_v57 = vld [vmem:[#allocation3 + $0xb] sm:$0xff]  ;;  %v1812_v40 = vld [vmem:[#allocation3 + $0x36] sm:$0xff] }
  0xed   :  { %v785_v41 = vpop.trf.xlu1  ;;  %3519 = vst [vmem:[#allocation13_spill] sm:$0xff] %v2900_v48  ;;  %v1495_v44 = vadd.f32 %v1463_v51, %v1334_v31  ;;  %v1809_v9 = vld [vmem:[#allocation3 + $0xe] sm:$0xff]  ;;  %v1658_v56 = vadd.f32 %v1626_v34, %v1497_v15  ;;  %v1808_v4 = vld [vmem:[#allocation3 + $0x6] sm:$0xff]  ;;  %v2922_v51 = vmul.f32 0.24203622, %v1596_v38  ;;  %v1844_v38 = vadd.f32 %v1812_v40, %v1780_v14 }
  0xee   :  { %802 = vst.msk [vmem:[#allocation2 + $0xd0] sm:$0xff] %vm24_vm7, %v785_v41  ;;  %v1049_v33 = vpop.trf.xlu2  ;;  %v720_v41 = vpop.trf.xlu0  ;;  %v1841_v0 = vadd.f32 %v1809_v9, %v1777_v19  ;;  %v1310_v34 = vmul.f32 0.004433048, %v1278_v47  ;;  %v1840_v15 = vadd.f32 %v1808_v4, %v1776_v62  ;;  %v2928_v9 = vld [vmem:[#allocation2 + $0x98] sm:$0xff]  ;;  %v1441_v47 = vadd.f32 %v2894_v26, %v2859_v45  ;;  %v1968_v4 = vld [vmem:[#allocation3 + $0x5] sm:$0xff] }
  0xef   :  { %1066 = vst.msk [vmem:[#allocation2 + $0x110] sm:$0xff] %vm24_vm7, %v1049_v33  ;;  %v1656_v11 = vadd.f32 %v2799_v55, %v1495_v44  ;;  %v1937_v33 = vld [vmem:[#allocation3 + $0x9] sm:$0xff]  ;;  %v2926_v55 = vmul.f32 0.004433048, %v1290_v1  ;;  %v1936_v1 = vld [vmem:[#allocation3 + $0x1] sm:$0xff] }
  0xf0   :  { %3520 = vst [vmem:[#allocation14_spill] sm:$0xff] %v2908_v43  ;;  %v1873_v19 = vmul.f32 0.004433048, %v1841_v0  ;;  %v1969_v44 = vld [vmem:[#allocation3 + $0xd] sm:$0xff]  ;;  %v1872_v14 = vmul.f32 0.004433048, %v1840_v15 }
  0xf1   :  { %3521 = vst [vmem:[#allocation15_spill] sm:$0xff] %v2914_v61  ;;  %v1779_v2 = vld [vmem:[#allocation3 + $0x20] sm:$0xff]  ;;  %v2097_v0 = vld [vmem:[#allocation3 + $0xa] sm:$0xff] }
  0xf2   :  { %1686 = vst.msk [vmem:[#allocation3 + $0x4b] sm:$0xff] %vm24_vm7, %v1654_v6  ;;  %v1810_v8 = vld [vmem:[#allocation3 + $0x1e] sm:$0xff]  ;;  %v1811_v23 = vld [vmem:[#allocation3 + $0x26] sm:$0xff]  ;;  %v1745_v6 = vmul.f32 0.39905027, %v1713_v57 }
  0xf3   :  { %3522 = vst [vmem:[#allocation16_spill] sm:$0xff] %v2919_v12  ;;  %v1715_v21 = vld [vmem:[#allocation3 + $0x23] sm:$0xff]  ;;  %v1842_v25 = vadd.f32 %v1810_v8, %v1778_v39  ;;  %v1843_v31 = vadd.f32 %v1811_v23, %v1779_v2  ;;  %v1717_v45 = vld [vmem:[#allocation3 + $0x3b] sm:$0xff] }
  0xf4   :  { %737 = vst.msk [vmem:[#allocation2 + $0xc8] sm:$0xff] %vm24_vm7, %v720_v41  ;;  %v1747_v39 = vmul.f32 0.39905027, %v1715_v21  ;;  %v1939_v12 = vld [vmem:[#allocation3 + $0x21] sm:$0xff]  ;;  %v1905_v62 = vadd.f32 %v1873_v19, %v1745_v6  ;;  %v2934_v21 = vmul.f32 0.39905027, %v2928_v9  ;;  %v2938_v6 = vadd.f32 %v2898_v30, %v2805_v29 }
  0xf5   :  { %3523 = vst [vmem:[#allocation17_spill] sm:$0xff] %v2922_v51  ;;  %v786_v41 = vpop.trf.xlu1  ;;  %v1875_v8 = vmul.f32 0.004433048, %v1843_v31  ;;  %v1874_v2 = vmul.f32 0.004433048, %v1842_v25  ;;  %v1970_v23 = vld [vmem:[#allocation3 + $0x1d] sm:$0xff] }
  0xf6   :  { %1690 = vst.msk [vmem:[#allocation3 + $0x7b] sm:$0xff] %vm24_vm7, %v1658_v56  ;;  %v1781_v56 = vld [vmem:[#allocation3 + $0x38] sm:$0xff]  ;;  %v1971_v48 = vld [vmem:[#allocation3 + $0x25] sm:$0xff]  ;;  %v2002_v25 = vadd.f32 %v1970_v23, %v1938_v27 }
  0xf7   :  { %1688 = vst.msk [vmem:[#allocation3 + $0x63] sm:$0xff] %vm24_vm7, %v1656_v11  ;;  %v2001_v11 = vadd.f32 %v1969_v44, %v1937_v33  ;;  %v1813_v57 = vld [vmem:[#allocation3 + $0x3e] sm:$0xff]  ;;  %v1907_v40 = vadd.f32 %v1875_v8, %v1747_v39  ;;  %v1972_v31 = vld [vmem:[#allocation3 + $0x35] sm:$0xff]  ;;  %v2129_v33 = vld [vmem:[#allocation3 + $0xc] sm:$0xff]  ;;  %v1876_v44 = vmul.f32 0.004433048, %v1844_v38  ;;  %v1906_v43 = vadd.f32 %v1874_v2, %v2834_v24 }
  0xf8   :  { %3524 = vst [vmem:[#allocation18_spill] sm:$0xff] %v2926_v55  ;;  %v2003_v55 = vadd.f32 %v1971_v48, %v1939_v12  ;;  %v2099_v10 = vld [vmem:[#allocation3 + $0x22] sm:$0xff]  ;;  %v1940_v19 = vld [vmem:[#allocation3 + $0x31] sm:$0xff]  ;;  %v2941_v39 = vmul.f32 0.054005582, %v1441_v47  ;;  %v2098_v27 = vld [vmem:[#allocation3 + $0x1a] sm:$0xff]  ;;  %v1845_v48 = vadd.f32 %v1813_v57, %v1781_v56  ;;  %v2946_v2 = vadd.f32 %v1310_v34, %v2848_v36  ;;  %v1050_v57 = vpop.trf.xlu2 }
  0xf9   :  { %803 = vst.msk [vmem:[#allocation2 + $0xd8] sm:$0xff] %vm24_vm7, %v786_v41  ;;  %v2033_v17 = vmul.f32 0.054005582, %v2001_v11  ;;  %v2130_v61 = vld [vmem:[#allocation3 + $0x1c] sm:$0xff]  ;;  %v2131_v26 = vld [vmem:[#allocation3 + $0x24] sm:$0xff]  ;;  %v2161_v41 = vadd.f32 %v2129_v33, %v2097_v0  ;;  %v2004_v12 = vadd.f32 %v1972_v31, %v1940_v19  ;;  %v1904_v11 = vadd.f32 %v1872_v14, %v2828_v16  ;;  %v2132_v51 = vld [vmem:[#allocation3 + $0x34] sm:$0xff] }
  0xfa   :  { %3525 = vst [vmem:[#allocation19_spill] sm:$0xff] %v2934_v21  ;;  %v2000_v21 = vadd.f32 %v1968_v4, %v1936_v1  ;;  %v2035_v15 = vmul.f32 0.054005582, %v2003_v55  ;;  %v2128_v38 = vld [vmem:[#allocation3 + $0x4] sm:$0xff]  ;;  %v2163_v23 = vadd.f32 %v2131_v26, %v2099_v10  ;;  %v2034_v0 = vmul.f32 0.054005582, %v2002_v25 }
  0xfb   :  { %v2065_v8 = vadd.f32 %v2033_v17, %v1905_v62  ;;  %v2162_v29 = vadd.f32 %v2130_v61, %v2098_v27  ;;  %v2096_v30 = vld [vmem:[#allocation3 + $0x2] sm:$0xff]  ;;  %v1908_v24 = vadd.f32 %v1876_v44, %v2831_v20  ;;  %v2193_v55 = vmul.f32 0.24203622, %v2161_v41  ;;  %v1941_v56 = vld [vmem:[#allocation3 + $0x39] sm:$0xff]  ;;  %1067 = vst.msk [vmem:[#allocation2 + $0x118] sm:$0xff] %vm24_vm7, %v1050_v57  ;;  %v917_v41 = vpop.trf.xlu0 }
  0xfc   :  { %v2067_v33 = vadd.f32 %v2035_v15, %v1907_v40  ;;  %v1269_v17 = vadd.f32 %v2928_v9, %v2766_v35  ;;  %v1973_v10 = vld [vmem:[#allocation3 + $0x3d] sm:$0xff]  ;;  %v2032_v26 = vmul.f32 0.054005582, %v2000_v21  ;;  %v2066_v16 = vadd.f32 %v2034_v0, %v1906_v43  ;;  %v2953_v31 = vld [vmem:[#allocation2 + $0xa8] sm:$0xff]  ;;  %934 = vst.msk [vmem:[#allocation2 + $0xf0] sm:$0xff] %vm24_vm7, %v917_v41 }
  0xfd   :  { %v2160_v47 = vadd.f32 %v2128_v38, %v2096_v30  ;;  %v2195_v1 = vmul.f32 0.24203622, %v2163_v23  ;;  %v1877_v61 = vmul.f32 0.004433048, %v1845_v48  ;;  %v2036_v62 = vmul.f32 0.054005582, %v2004_v12  ;;  %v983_v19 = vpop.trf.xlu1 }
  0xfe   :  { %v2164_v4 = vadd.f32 %v2132_v51, %v2100_v18  ;;  %v2225_v14 = vadd.f32 %v2193_v55, %v2065_v8  ;;  %v2064_v20 = vadd.f32 %v2032_v26, %v1904_v11  ;;  %v2194_v40 = vmul.f32 0.24203622, %v2162_v29  ;;  %v2101_v15 = vld [vmem:[#allocation3 + $0x3a] sm:$0xff]  ;;  %1000 = vst.msk [vmem:[#allocation2 + $0x100] sm:$0xff] %vm24_vm7, %v983_v19 }
  0xff   :  { %v2227_v36 = vadd.f32 %v2195_v1, %v2067_v33  ;;  %v1432_v34 = vadd.f32 %v2928_v9, %v2759_v63  ;;  %v1749_v25 = vmul.f32 0.39905027, %v1717_v45  ;;  %v2005_v21 = vadd.f32 %v1973_v10, %v1941_v56  ;;  %v2133_v18 = vld [vmem:[#allocation3 + $0x3c] sm:$0xff] }
 0x100   :  { %v2068_v43 = vadd.f32 %v2036_v62, %v1908_v24  ;;  %v2289_v44 = vsub.f32 %v2766_v35, %v2225_v14  ;;  %v2192_v51 = vmul.f32 0.24203622, %v2160_v47  ;;  %v2226_v27 = vadd.f32 %v2194_v40, %v2066_v16  ;;  %v2963_v29 = vld [vmem:[#allocation2 + $0xc0] sm:$0xff]  ;;  %v2980_v14 = vld [vmem:[#allocation2 + $0xe8] sm:$0xff] }
 0x101   :  { %v2291_v48 = vsub.f32 %v2826_v13, %v2227_v36  ;;  %v1301_v12 = vmul.f32 0.004433048, %v1269_v17  ;;  %v1909_v8 = vadd.f32 %v1877_v61, %v1749_v25  ;;  %v2196_v38 = vmul.f32 0.24203622, %v2164_v4  ;;  %v1718_v61 = vld [vmem:[#allocation3 + $0x4b] sm:$0xff] }
 0x102   :  { %v2321_v23 = vmul.f32 %v2289_v44, %v2289_v44  ;;  %v1271_v11 = vadd.f32 %v2953_v31, %v2826_v13  ;;  %v2224_v45 = vadd.f32 %v2192_v51, %v2064_v20  ;;  %v1434_v33 = vadd.f32 %v2953_v31, %v2755_v7 }
 0x103   :  { %v2323_v0 = vmul.f32 %v2291_v48, %v2291_v48  ;;  %v1333_v35 = vadd.f32 %v1301_v12, %v2794_v50  ;;  %v2037_v30 = vmul.f32 0.054005582, %v2005_v21  ;;  %v2165_v24 = vadd.f32 %v2133_v18, %v2101_v15  ;;  %v1720_v21 = vld [vmem:[#allocation3 + $0x63] sm:$0xff]  ;;  %v2994_v15 = vld [vmem:[#allocation2 + $0xd0] sm:$0xff] }
 0x104   :  { %v2228_v55 = vadd.f32 %v2196_v38, %v2068_v43  ;;  %v1595_v17 = vadd.f32 %v2928_v9, %v2816_v5  ;;  %v2290_v13 = vsub.f32 %v2736_v59, %v2226_v27  ;;  %v2383_v56 = vsel %vm24_vm7, %v2321_v23, 0.0  ;;  %v1722_v43 = vld [vmem:[#allocation3 + $0x7b] sm:$0xff]  ;;  %3527 = vst [vmem:[#allocation21_spill] sm:$0xff] %v2994_v15 }
 0x105   :  { %v2384_v10 = vsel %vm24_vm7, %v2323_v0, 0.0  ;;  %v1494_v50 = vadd.f32 %v2876_v49, %v1333_v35  ;;  %v2069_v26 = vadd.f32 %v2037_v30, %v1909_v8  ;;  %v1599_v47 = vadd.f32 %v2855_v32, %v2928_v9  ;;  %v1782_v35 = vld [vmem:[#allocation3 + $0x48] sm:$0xff] }
 0x106   :  { %v2972_v16 = vadd.f32 %v2384_v10, %v2383_v56  ;;  %v1274_v1 = vadd.f32 %v2963_v29, %v2691_v46  ;;  %v2288_v57 = vsub.f32 %v2708_v54, %v2224_v45  ;;  %v1303_v62 = vmul.f32 0.004433048, %v1271_v11  ;;  %v3004_v11 = vld [vmem:[#allocation2 + $0x148] sm:$0xff] }
 0x107   :  { %v1655_v59 = vadd.f32 %v2864_v60, %v1494_v50  ;;  %v1466_v4 = vmul.f32 0.054005582, %v1434_v33  ;;  %v2197_v20 = vmul.f32 0.24203622, %v2165_v24  ;;  %v2292_v49 = vsub.f32 %v2706_v52, %v2228_v55  ;;  %v3529_v55 = vld [vmem:[#allocation8_spill] sm:$0xff] }
 0x108   :  { %3526 = vst [vmem:[#allocation20_spill] sm:$0xff] %v2972_v16  ;;  %v1464_v40 = vmul.f32 0.054005582, %v1432_v34  ;;  %v1597_v36 = vadd.f32 %v2953_v31, %v2778_v42  ;;  %v2322_v25 = vmul.f32 %v2290_v13, %v2290_v13  ;;  %v1627_v44 = vmul.f32 0.24203622, %v1595_v17  ;;  %v918_v17 = vpop.trf.xlu0 }
 0x109   :  { %1687 = vst.msk [vmem:[#allocation3 + $0x53] sm:$0xff] %vm24_vm7, %v1655_v59  ;;  %v1335_v54 = vadd.f32 %v1303_v62, %v2851_v37  ;;  %v1498_v60 = vadd.f32 %v1466_v4, %v2938_v6  ;;  %v2988_v41 = vmul.f32 0.39905027, %v1718_v61  ;;  %v1279_v19 = vadd.f32 %v2980_v14, %v2778_v42  ;;  %v3531_v61 = vld [vmem:[#allocation17_spill] sm:$0xff] }
 0x10a   :  { %v1442_v52 = vadd.f32 %v2980_v14, %v2953_v31  ;;  %v1306_v34 = vmul.f32 0.004433048, %v1274_v1  ;;  %v2229_v18 = vadd.f32 %v2197_v20, %v2069_v26  ;;  %v2320_v51 = vmul.f32 %v2288_v57, %v2288_v57  ;;  %935 = vst.msk [vmem:[#allocation2 + $0xf8] sm:$0xff] %vm24_vm7, %v918_v17  ;;  %v2102_v4 = vld [vmem:[#allocation3 + $0x4a] sm:$0xff] }
 0x10b   :  { %v1496_v27 = vadd.f32 %v1464_v40, %v1335_v54  ;;  %v1659_v48 = vadd.f32 %v1627_v44, %v1498_v60  ;;  %v2324_v12 = vmul.f32 %v2292_v49, %v2292_v49  ;;  %v2996_v8 = vmul.f32 0.39905027, %v1720_v21  ;;  %v3532_v21 = vld [vmem:[#allocation14_spill] sm:$0xff] }
 0x10c   :  { %v2998_v37 = vmul.f32 0.39905027, %v1722_v43  ;;  %v1338_v6 = vadd.f32 %v1306_v34, %v2890_v22  ;;  %v2353_v38 = vsel %vm24_vm7, %v2322_v25, 0.0  ;;  %v1437_v45 = vadd.f32 %v2963_v29, %v2699_v28  ;;  %v3528_v22 = vld [vmem:[#allocation9_spill] sm:$0xff]  ;;  %v1786_v54 = vld [vmem:[#allocation3 + $0x78] sm:$0xff] }
 0x10d   :  { %v1657_v23 = vadd.f32 %v2814_v3, %v1496_v27  ;;  %1691 = vst.msk [vmem:[#allocation3 + $0x83] sm:$0xff] %vm24_vm7, %v1659_v48  ;;  %v1276_v0 = vadd.f32 %v2994_v15, %v2714_v58  ;;  %v3010_v33 = vmul.f32 0.24203622, %v1599_v47  ;;  %v1600_v24 = vadd.f32 %v2963_v29, %v3528_v22  ;;  %v1946_v60 = vld [vmem:[#allocation3 + $0x79] sm:$0xff] }
 0x10e   :  { %v1499_v30 = vadd.f32 %v2861_v53, %v1338_v6  ;;  %v1439_v3 = vadd.f32 %v2994_v15, %v3529_v55  ;;  %v3018_v13 = vsub.f32 %v2759_v63, %v2229_v18  ;;  %v2352_v56 = vsel %vm24_vm7, %v2320_v51, 0.0  ;;  %v1942_v53 = vld [vmem:[#allocation3 + $0x49] sm:$0xff]  ;;  %v984_v63 = vpop.trf.xlu1 }
 0x10f   :  { %v3022_v10 = vmul.f32 0.39905027, %v2953_v31  ;;  %1689 = vst.msk [vmem:[#allocation3 + $0x6b] sm:$0xff] %vm24_vm7, %v1657_v23  ;;  %v1308_v50 = vmul.f32 0.004433048, %v1276_v0  ;;  %v2354_v26 = vadd.f32 %v2353_v38, %v2352_v56  ;;  %v1291_v57 = vadd.f32 %v3004_v11, %v2980_v14 }
 0x110   :  { %3530 = vst [vmem:[#allocation9_spill] sm:$0xff] %v3018_v13  ;;  %v1814_v47 = vld [vmem:[#allocation3 + $0x4e] sm:$0xff]  ;;  %v1660_v59 = vadd.f32 %v3531_v61, %v1499_v30  ;;  %v1471_v62 = vmul.f32 0.054005582, %v1439_v3  ;;  %v1469_v25 = vmul.f32 0.054005582, %v1437_v45 }
 0x111   :  { %v1974_v1 = vld [vmem:[#allocation3 + $0x4d] sm:$0xff]  ;;  %v1846_v20 = vadd.f32 %v1814_v47, %v1782_v35  ;;  %v1340_v43 = vadd.f32 %v1308_v50, %v3532_v21  ;;  %1001 = vst.msk [vmem:[#allocation2 + $0x108] sm:$0xff] %vm24_vm7, %v984_v63  ;;  %v2355_v44 = vsel %vm24_vm7, %v2324_v12, 0.0  ;;  %v3032_v34 = vmul.f32 0.24203622, %v1597_v36  ;;  %v1784_v30 = vld [vmem:[#allocation3 + $0x60] sm:$0xff] }
 0x112   :  { %v2006_v49 = vadd.f32 %v1974_v1, %v1942_v53  ;;  %v2134_v40 = vld [vmem:[#allocation3 + $0x4c] sm:$0xff]  ;;  %v1632_v18 = vmul.f32 0.24203622, %v1600_v24  ;;  %1692 = vst.msk [vmem:[#allocation3 + $0x93] sm:$0xff] %vm24_vm7, %v1660_v59  ;;  %v1503_v51 = vadd.f32 %v1471_v62, %v2946_v2  ;;  %v3037_v48 = vmul.f32 0.39905027, %v2980_v14 }
 0x113   :  { %v1878_v27 = vmul.f32 0.004433048, %v1846_v20  ;;  %v1311_v6 = vmul.f32 0.004433048, %v1279_v19  ;;  %v1501_v38 = vadd.f32 %v1469_v25, %v1340_v43  ;;  %v2166_v23 = vadd.f32 %v2134_v40, %v2102_v4  ;;  %v3044_v50 = vld [vmem:[#allocation2 + $0xc8] sm:$0xff]  ;;  %v3534_v59 = vld [vmem:[#allocation15_spill] sm:$0xff] }
 0x114   :  { %v1818_v45 = vld [vmem:[#allocation3 + $0x7e] sm:$0xff]  ;;  %v3039_v35 = vmul.f32 0.004433048, %v1291_v57  ;;  %v3041_v12 = vmul.f32 0.054005582, %v1442_v52  ;;  %v1664_v36 = vadd.f32 %v1632_v18, %v1503_v51  ;;  %v3046_v53 = vadd.f32 %v2355_v44, %v2354_v26  ;;  %v3055_v40 = vld [vmem:[#allocation2 + $0x130] sm:$0xff] }
 0x115   :  { %v1978_v0 = vld [vmem:[#allocation3 + $0x7d] sm:$0xff]  ;;  %v1910_v24 = vadd.f32 %v1878_v27, %v2988_v41  ;;  %v2038_v3 = vmul.f32 0.054005582, %v2006_v49  ;;  %v1850_v17 = vadd.f32 %v1818_v45, %v1786_v54  ;;  %v3049_v57 = vmul.f32 0.39905027, %v2963_v29 }
 0x116   :  { %v2010_v2 = vadd.f32 %v1978_v0, %v1946_v60  ;;  %v2138_v56 = vld [vmem:[#allocation3 + $0x7c] sm:$0xff]  ;;  %v1816_v47 = vld [vmem:[#allocation3 + $0x66] sm:$0xff]  ;;  %v1662_v62 = vadd.f32 %v3534_v59, %v1501_v38  ;;  %1696 = vst.msk [vmem:[#allocation3 + $0xc3] sm:$0xff] %vm24_vm7, %v1664_v36  ;;  %v3059_v54 = vmul.f32 0.39905027, %v2994_v15  ;;  %v3062_v60 = vld [vmem:[#allocation2 + $0x110] sm:$0xff]  ;;  %v1275_v18 = vadd.f32 %v3044_v50, %v2755_v7 }
 0x117   :  { %v1944_v19 = vld [vmem:[#allocation3 + $0x61] sm:$0xff]  ;;  %v2070_v63 = vadd.f32 %v2038_v3, %v1910_v24  ;;  %v1848_v4 = vadd.f32 %v1816_v47, %v1784_v30  ;;  %v1882_v20 = vmul.f32 0.004433048, %v1850_v17  ;;  %v3535_v43 = vld [vmem:[#allocation10_spill] sm:$0xff]  ;;  %v2198_v27 = vmul.f32 0.24203622, %v2166_v23 }
 0x118   :  { %v1976_v1 = vld [vmem:[#allocation3 + $0x65] sm:$0xff]  ;;  %v2106_v41 = vld [vmem:[#allocation3 + $0x7a] sm:$0xff]  ;;  %v1343_v44 = vadd.f32 %v1311_v6, %v3535_v43  ;;  %1694 = vst.msk [vmem:[#allocation3 + $0xab] sm:$0xff] %vm24_vm7, %v1662_v62  ;;  %v2042_v0 = vmul.f32 0.054005582, %v2010_v2  ;;  %v1288_v6 = vadd.f32 %v3055_v40, %v2994_v15  ;;  %v1447_v59 = vadd.f32 %v3062_v60, %v2994_v15 }
 0x119   :  { %v3533_v52 = vld [vmem:[#allocation11_spill] sm:$0xff]  ;;  %v2008_v49 = vadd.f32 %v1976_v1, %v1944_v19  ;;  %v2170_v21 = vadd.f32 %v2138_v56, %v2106_v41  ;;  %v3066_v51 = vld [vmem:[#allocation2 + $0xd8] sm:$0xff]  ;;  %v1880_v38 = vmul.f32 0.004433048, %v1848_v4  ;;  %v1914_v45 = vadd.f32 %v1882_v20, %v2998_v37 }
 0x11a   :  { %v1604_v61 = vadd.f32 %v3533_v52, %v2963_v29  ;;  %v2136_v26 = vld [vmem:[#allocation3 + $0x64] sm:$0xff]  ;;  %v2230_v17 = vadd.f32 %v2198_v27, %v2070_v63  ;;  %v1307_v37 = vmul.f32 0.004433048, %v1275_v18  ;;  %v1277_v2 = vadd.f32 %v3066_v51, %v2816_v5  ;;  %v3538_v27 = vld [vmem:[#allocation13_spill] sm:$0xff] }
 0x11b   :  { %v2104_v25 = vld [vmem:[#allocation3 + $0x62] sm:$0xff]  ;;  %v1912_v56 = vadd.f32 %v1880_v38, %v2996_v8  ;;  %v2040_v7 = vmul.f32 0.054005582, %v2008_v49  ;;  %v2074_v19 = vadd.f32 %v2042_v0, %v1914_v45  ;;  %v2202_v47 = vmul.f32 0.24203622, %v2170_v21  ;;  %v1115_v49 = vpop.trf.xlu0  ;;  %v1724_v0 = vld [vmem:[#allocation3 + $0x93] sm:$0xff] }
 0x11c   :  { %v2168_v36 = vadd.f32 %v2136_v26, %v2104_v25  ;;  %v3069_v30 = vmul.f32 0.24203622, %v1604_v61  ;;  %v3536_v24 = vld [vmem:[#allocation7_spill] sm:$0xff]  ;;  %v1194_v61 = vmul.f32 0.39905027, %v3062_v60  ;;  %v1440_v62 = vadd.f32 %v3066_v51, %v2928_v9  ;;  %1132 = vst.msk [vmem:[#allocation2 + $0x120] sm:$0xff] %vm24_vm7, %v1115_v49 }
 0x11d   :  { %v1602_v3 = vadd.f32 %v2994_v15, %v3536_v24  ;;  %v1284_v23 = vadd.f32 %v3062_v60, %v3536_v24  ;;  %v2072_v1 = vadd.f32 %v2040_v7, %v1912_v56  ;;  %v2234_v41 = vadd.f32 %v2202_v47, %v2074_v19  ;;  %v3537_v63 = vld [vmem:[#allocation19_spill] sm:$0xff] }
 0x11e   :  { %v2200_v8 = vmul.f32 0.24203622, %v2168_v36  ;;  %v1339_v4 = vadd.f32 %v1307_v37, %v3537_v63  ;;  %v1438_v20 = vadd.f32 %v3044_v50, %v2778_v42  ;;  %v2294_v26 = vsub.f32 %v2691_v46, %v2230_v17  ;;  %v3539_v36 = vld [vmem:[#allocation18_spill] sm:$0xff]  ;;  %v1728_v37 = vld [vmem:[#allocation3 + $0xc3] sm:$0xff] }
 0x11f   :  { %v3089_v5 = vmul.f32 0.004433048, %v1288_v6  ;;  %v3091_v25 = vmul.f32 0.24203622, %v1602_v3  ;;  %v1601_v21 = vadd.f32 %v3044_v50, %v2953_v31  ;;  %v1316_v18 = vmul.f32 0.004433048, %v1284_v23 }
 0x120   :  { %v2232_v43 = vadd.f32 %v2200_v8, %v2072_v1  ;;  %v1500_v38 = vadd.f32 %v3538_v27, %v1339_v4  ;;  %v1309_v45 = vmul.f32 0.004433048, %v1277_v2  ;;  %v3098_v42 = vadd.f32 %v3539_v36, %v1194_v61  ;;  %v3104_v6 = vld [vmem:[#allocation2 + $0x138] sm:$0xff] }
 0x121   :  { %v3100_v56 = vmul.f32 0.054005582, %v1447_v59  ;;  %v1614_v46 = vadd.f32 %v3055_v40, %v3062_v60  ;;  %v1472_v3 = vmul.f32 0.054005582, %v1440_v62  ;;  %v2298_v17 = vsub.f32 %v2699_v28, %v2234_v41  ;;  %v3111_v59 = vld [vmem:[#allocation2 + $0x118] sm:$0xff]  ;;  %v1726_v62 = vld [vmem:[#allocation3 + $0xab] sm:$0xff] }
 0x122   :  { %v1470_v7 = vmul.f32 0.054005582, %v1438_v20  ;;  %v1661_v19 = vadd.f32 %v3032_v34, %v1500_v38  ;;  %v1341_v47 = vadd.f32 %v1309_v45, %v3022_v10  ;;  %v2326_v23 = vmul.f32 %v2294_v26, %v2294_v26  ;;  %v3119_v10 = vld [vmem:[#allocation2 + $0xf0] sm:$0xff] }
 0x123   :  { %v1605_v2 = vadd.f32 %v2980_v14, %v3044_v50  ;;  %v1633_v1 = vmul.f32 0.24203622, %v1601_v21  ;;  %v1504_v61 = vadd.f32 %v1472_v3, %v1343_v44  ;;  %v2296_v8 = vsub.f32 %v2714_v58, %v2232_v43  ;;  %v3133_v43 = vld [vmem:[#allocation2 + $0x100] sm:$0xff] }
 0x124   :  { %v3114_v63 = vmul.f32 0.39905027, %v1724_v0  ;;  %1693 = vst.msk [vmem:[#allocation3 + $0x9b] sm:$0xff] %vm24_vm7, %v1661_v19  ;;  %v1289_v28 = vadd.f32 %v3104_v6, %v3066_v51  ;;  %v1502_v34 = vadd.f32 %v1470_v7, %v1341_v47  ;;  %v3121_v41 = vmul.f32 0.24203622, %v1614_v46  ;;  %v1116_v7 = vpop.trf.xlu0 }
 0x125   :  { %v3124_v4 = vmul.f32 0.39905027, %v3044_v50  ;;  %v1603_v44 = vadd.f32 %v3066_v51, %v2855_v32  ;;  %v1665_v58 = vadd.f32 %v1633_v1, %v1504_v61  ;;  %v2330_v20 = vmul.f32 %v2298_v17, %v2298_v17  ;;  %1133 = vst.msk [vmem:[#allocation2 + $0x128] sm:$0xff] %vm24_vm7, %v1116_v7 }
 0x126   :  { %v3128_v49 = vmul.f32 0.39905027, %v1728_v37  ;;  %v1663_v26 = vadd.f32 %v3010_v33, %v1502_v34  ;;  %v1285_v21 = vadd.f32 %v3111_v59, %v2855_v32  ;;  %v2357_v27 = vsel %vm24_vm7, %v2326_v23, 0.0  ;;  %v3540_v33 = vld [vmem:[#allocation16_spill] sm:$0xff]  ;;  %v1788_v34 = vld [vmem:[#allocation3 + $0x90] sm:$0xff] }
 0x127   :  { %v3136_v38 = vmul.f32 0.24203622, %v1605_v2  ;;  %1697 = vst.msk [vmem:[#allocation3 + $0xcb] sm:$0xff] %vm24_vm7, %v1665_v58  ;;  %v1195_v45 = vmul.f32 0.39905027, %v3111_v59  ;;  %v1280_v0 = vadd.f32 %v3119_v10, %v3529_v55  ;;  %v2328_v36 = vmul.f32 %v2296_v8, %v2296_v8  ;;  %v1260_v8 = vld [vmem:[#allocation2 + $0x150] sm:$0xff] }
 0x128   :  { %v3142_v46 = vmul.f32 0.39905027, %v1726_v62  ;;  %v1348_v3 = vadd.f32 %v1316_v18, %v3540_v33  ;;  %v3146_v17 = vmul.f32 0.39905027, %v3066_v51  ;;  %1695 = vst.msk [vmem:[#allocation3 + $0xb3] sm:$0xff] %vm24_vm7, %v1663_v26  ;;  %v1443_v23 = vadd.f32 %v3119_v10, %v3536_v24 }
 0x129   :  { %v3149_v19 = vmul.f32 0.004433048, %v1289_v28  ;;  %v1312_v47 = vmul.f32 0.004433048, %v1280_v0  ;;  %v1282_v37 = vadd.f32 %v3133_v43, %v3528_v22  ;;  %v3156_v2 = vadd.f32 %v2357_v27, %v3046_v53 }
 0x12a   :  { %v3159_v18 = vsel %vm24_vm7, %v2330_v20, 0.0  ;;  %v3161_v1 = vmul.f32 0.24203622, %v1603_v44  ;;  %v1317_v61 = vmul.f32 0.004433048, %v1285_v21  ;;  %v3164_v58 = vadd.f32 %v3039_v35, %v1195_v45  ;;  %v1948_v35 = vld [vmem:[#allocation3 + $0x91] sm:$0xff] }
 0x12b   :  { %3541 = vst [vmem:[#allocation8_spill] sm:$0xff] %v3156_v2  ;;  %v1820_v28 = vld [vmem:[#allocation3 + $0x96] sm:$0xff]  ;;  %v1344_v24 = vadd.f32 %v1312_v47, %v3049_v57  ;;  %v1314_v26 = vmul.f32 0.004433048, %v1282_v37  ;;  %v1445_v22 = vadd.f32 %v3133_v43, %v2963_v29  ;;  %v3171_v53 = vsel %vm24_vm7, %v2328_v36, 0.0 }
 0x12c   :  { %3542 = vst [vmem:[#allocation17_spill] sm:$0xff] %v3159_v18  ;;  %v1980_v62 = vld [vmem:[#allocation3 + $0x95] sm:$0xff]  ;;  %v1852_v44 = vadd.f32 %v1820_v28, %v1788_v34  ;;  %v1448_v20 = vadd.f32 %v3111_v59, %v3066_v51  ;;  %v1615_v21 = vadd.f32 %v3104_v6, %v3111_v59  ;;  %v1475_v27 = vmul.f32 0.054005582, %v1443_v23 }
 0x12d   :  { %3543 = vst [vmem:[#allocation14_spill] sm:$0xff] %v3171_v53  ;;  %v1505_v57 = vadd.f32 %v2941_v39, %v1344_v24  ;;  %v1346_v45 = vadd.f32 %v1314_v26, %v3059_v54  ;;  %v1477_v0 = vmul.f32 0.054005582, %v1445_v22  ;;  %v2012_v47 = vadd.f32 %v1980_v62, %v1948_v35  ;;  %v2108_v37 = vld [vmem:[#allocation3 + $0x92] sm:$0xff]  ;;  %v1790_v54 = vld [vmem:[#allocation3 + $0xa8] sm:$0xff]  ;;  %v1792_v26 = vld [vmem:[#allocation3 + $0xc0] sm:$0xff] }
 0x12e   :  { %v1884_v33 = vmul.f32 0.004433048, %v1852_v44  ;;  %v1292_v7 = vadd.f32 %v1260_v8, %v3119_v10  ;;  %v1606_v36 = vadd.f32 %v3119_v10, %v2994_v15  ;;  %v2140_v34 = vld [vmem:[#allocation3 + $0x94] sm:$0xff]  ;;  %v3183_v28 = vadd.f32 %v1317_v61, %v3037_v48  ;;  %v1824_v8 = vld [vmem:[#allocation3 + $0xc6] sm:$0xff] }
 0x12f   :  { %v1451_v23 = vadd.f32 %v3055_v40, %v3119_v10  ;;  %v1666_v39 = vadd.f32 %v3091_v25, %v1505_v57  ;;  %v1507_v24 = vadd.f32 %v1475_v27, %v1346_v45  ;;  %v1822_v22 = vld [vmem:[#allocation3 + $0xae] sm:$0xff]  ;;  %v3189_v44 = vmul.f32 0.054005582, %v1448_v20  ;;  %v1159_v48 = vld [vmem:[#allocation2 + $0xf8] sm:$0xff] }
 0x130   :  { %v1916_v62 = vadd.f32 %v1884_v33, %v3114_v63  ;;  %v3192_v35 = vmul.f32 0.39905027, %v3119_v10  ;;  %v1509_v15 = vadd.f32 %v1477_v0, %v1348_v3  ;;  %v1982_v61 = vld [vmem:[#allocation3 + $0xad] sm:$0xff]  ;;  %v3194_v16 = vmul.f32 0.24203622, %v1615_v21  ;;  %v1984_v21 = vld [vmem:[#allocation3 + $0xc5] sm:$0xff] }
 0x131   :  { %v1610_v40 = vadd.f32 %v3062_v60, %v3119_v10  ;;  %1698 = vst.msk [vmem:[#allocation3 + $0xdb] sm:$0xff] %vm24_vm7, %v1666_v39  ;;  %v1192_v25 = vmul.f32 0.39905027, %v3133_v43  ;;  %v3545_v63 = vld [vmem:[#allocation12_spill] sm:$0xff]  ;;  %v2044_v20 = vmul.f32 0.054005582, %v2012_v47  ;;  %v2172_v57 = vadd.f32 %v2140_v34, %v2108_v37 }
 0x132   :  { %3544 = vst [vmem:[#allocation11_spill] sm:$0xff] %v3194_v16  ;;  %v1453_v27 = vadd.f32 %v3545_v63, %v3133_v43  ;;  %v3202_v45 = vmul.f32 0.004433048, %v1292_v7  ;;  %v1638_v33 = vmul.f32 0.24203622, %v1606_v36  ;;  %v1950_v3 = vld [vmem:[#allocation3 + $0xa9] sm:$0xff]  ;;  %v1854_v0 = vadd.f32 %v1822_v22, %v1790_v54 }
 0x133   :  { %v1856_v13 = vadd.f32 %v1824_v8, %v1792_v26  ;;  %v2142_v18 = vld [vmem:[#allocation3 + $0xac] sm:$0xff]  ;;  %v1483_v16 = vmul.f32 0.054005582, %v1451_v23  ;;  %v1668_v60 = vadd.f32 %v3069_v30, %v1507_v24  ;;  %v1952_v10 = vld [vmem:[#allocation3 + $0xc1] sm:$0xff]  ;;  %v2076_v53 = vadd.f32 %v2044_v20, %v1916_v62  ;;  %v1261_v37 = vld [vmem:[#allocation2 + $0x158] sm:$0xff] }
 0x134   :  { %v2110_v39 = vld [vmem:[#allocation3 + $0xaa] sm:$0xff]  ;;  %v2014_v2 = vadd.f32 %v1982_v61, %v1950_v3  ;;  %v1608_v63 = vadd.f32 %v3133_v43, %v3533_v52  ;;  %v1670_v47 = vadd.f32 %v1638_v33, %v1509_v15  ;;  %v3209_v34 = vmul.f32 0.24203622, %v1610_v40  ;;  %v2112_v24 = vld [vmem:[#allocation3 + $0xc2] sm:$0xff] }
 0x135   :  { %v3207_v7 = vld [vmem:[#allocation2 + $0x108] sm:$0xff]  ;;  %v3212_v54 = vadd.f32 %v3089_v5, %v1192_v25  ;;  %v3214_v23 = vmul.f32 0.054005582, %v1453_v27  ;;  %1700 = vst.msk [vmem:[#allocation3 + $0xf3] sm:$0xff] %vm24_vm7, %v1668_v60  ;;  %v1281_v30 = vadd.f32 %v1159_v48, %v2928_v9  ;;  %v2204_v26 = vmul.f32 0.24203622, %v2172_v57 }
 0x136   :  { %v2144_v36 = vld [vmem:[#allocation3 + $0xc4] sm:$0xff]  ;;  %v2016_v62 = vadd.f32 %v1984_v21, %v1952_v10  ;;  %v2174_v22 = vadd.f32 %v2142_v18, %v2110_v39  ;;  %1702 = vst.msk [vmem:[#allocation3 + $0x10b] sm:$0xff] %vm24_vm7, %v1670_v47  ;;  %v3219_v15 = vmul.f32 0.39905027, %v1159_v48  ;;  %v1886_v8 = vmul.f32 0.004433048, %v1854_v0 }
 0x137   :  { %v1888_v61 = vmul.f32 0.004433048, %v1856_v13  ;;  %v1515_v40 = vadd.f32 %v1483_v16, %v3098_v42  ;;  %v1313_v5 = vmul.f32 0.004433048, %v1281_v30  ;;  %v2236_v25 = vadd.f32 %v2204_v26, %v2076_v53  ;;  %v3243_v39 = vld [vmem:[#allocation2 + $0x120] sm:$0xff] }
 0x138   :  { %v2046_v27 = vmul.f32 0.054005582, %v2014_v2  ;;  %v2176_v20 = vadd.f32 %v2144_v36, %v2112_v24  ;;  %v3222_v33 = vmul.f32 0.24203622, %v1608_v63  ;;  %v1293_v3 = vadd.f32 %v1261_v37, %v1159_v48  ;;  %v1730_v53 = vld [vmem:[#allocation3 + $0xdb] sm:$0xff]  ;;  %3546 = vst [vmem:[#allocation15_spill] sm:$0xff] %v3243_v39 }
 0x139   :  { %v1345_v9 = vadd.f32 %v1313_v5, %v3124_v4  ;;  %v1444_v57 = vadd.f32 %v1159_v48, %v2855_v32  ;;  %v1283_v18 = vadd.f32 %v3207_v7, %v2953_v31  ;;  %v2048_v21 = vmul.f32 0.054005582, %v2016_v62 }
 0x13a   :  { %v3228_v60 = vmul.f32 0.24203622, %v2174_v22  ;;  %v1452_v13 = vadd.f32 %v3104_v6, %v1159_v48  ;;  %v1607_v16 = vadd.f32 %v1159_v48, %v3066_v51  ;;  %v1918_v42 = vadd.f32 %v1886_v8, %v3142_v46  ;;  %v3262_v22 = vld [vmem:[#allocation2 + $0x128] sm:$0xff] }
 0x13b   :  { %v1920_v2 = vadd.f32 %v1888_v61, %v3128_v49  ;;  %v1506_v0 = vadd.f32 %v3041_v12, %v1345_v9  ;;  %v1611_v4 = vadd.f32 %v3111_v59, %v1159_v48  ;;  %v3237_v32 = vsub.f32 %v3529_v55, %v2236_v25  ;;  %3547 = vst [vmem:[#allocation10_spill] sm:$0xff] %v3262_v22 }
 0x13c   :  { %v3239_v31 = vmul.f32 0.24203622, %v2176_v20  ;;  %v1315_v10 = vmul.f32 0.004433048, %v1283_v18  ;;  %v1446_v6 = vadd.f32 %v3207_v7, %v3044_v50  ;;  %v1325_v51 = vmul.f32 0.004433048, %v1293_v3 }
 0x13d   :  { %v1476_v46 = vmul.f32 0.054005582, %v1444_v57  ;;  %v1667_v49 = vadd.f32 %v3161_v1, %v1506_v0  ;;  %v1193_v63 = vmul.f32 0.39905027, %v3207_v7  ;;  %v3247_v12 = vmul.f32 0.39905027, %v1730_v53 }
 0x13e   :  { %v3249_v59 = vmul.f32 0.054005582, %v1452_v13  ;;  %v1639_v55 = vmul.f32 0.24203622, %v1607_v16  ;;  %v1347_v48 = vadd.f32 %v1315_v10, %v3146_v17  ;;  %v3252_v47 = vadd.f32 %v2046_v27, %v1918_v42  ;;  %v1954_v16 = vld [vmem:[#allocation3 + $0xd9] sm:$0xff] }
 0x13f   :  { %v3254_v37 = vadd.f32 %v2048_v21, %v1920_v2  ;;  %v1643_v36 = vmul.f32 0.24203622, %v1611_v4  ;;  %1699 = vst.msk [vmem:[#allocation3 + $0xe3] sm:$0xff] %vm24_vm7, %v1667_v49  ;;  %v1478_v30 = vmul.f32 0.054005582, %v1446_v6  ;;  %v1286_v26 = vadd.f32 %v3243_v39, %v2963_v29  ;;  %v1732_v49 = vld [vmem:[#allocation3 + $0xf3] sm:$0xff] }
 0x140   :  { %v1508_v24 = vadd.f32 %v1476_v46, %v1347_v48  ;;  %v1196_v1 = vmul.f32 0.39905027, %v3243_v39  ;;  %v1449_v62 = vadd.f32 %v3243_v39, %v3533_v52  ;;  %v1353_v17 = vadd.f32 %v3149_v19, %v1193_v63  ;;  %v1734_v48 = vld [vmem:[#allocation3 + $0x10b] sm:$0xff] }
 0x141   :  { %v1454_v8 = vadd.f32 %v3004_v11, %v3207_v7  ;;  %v1510_v61 = vadd.f32 %v1478_v30, %v3183_v28  ;;  %v1612_v5 = vadd.f32 %v3243_v39, %v3133_v43  ;;  %v1318_v27 = vmul.f32 0.004433048, %v1286_v26  ;;  %v1796_v30 = vld [vmem:[#allocation3 + $0xf0] sm:$0xff] }
 0x142   :  { %v1669_v25 = vadd.f32 %v3136_v38, %v1508_v24  ;;  %v1356_v20 = vadd.f32 %v3202_v45, %v1196_v1  ;;  %v1481_v3 = vmul.f32 0.054005582, %v1449_v62  ;;  %v1197_v57 = vmul.f32 0.39905027, %v3262_v22  ;;  %v1794_v45 = vld [vmem:[#allocation3 + $0xd8] sm:$0xff]  ;;  %v1798_v62 = vld [vmem:[#allocation3 + $0x108] sm:$0xff] }
 0x143   :  { %v1671_v9 = vadd.f32 %v1639_v55, %v1510_v61  ;;  %v1644_v52 = vmul.f32 0.24203622, %v1612_v5  ;;  %v1287_v19 = vadd.f32 %v3262_v22, %v3044_v50  ;;  %v1350_v11 = vadd.f32 %v1318_v27, %v3192_v35  ;;  %v1956_v24 = vld [vmem:[#allocation3 + $0xf1] sm:$0xff] }
 0x144   :  { %1701 = vst.msk [vmem:[#allocation3 + $0xfb] sm:$0xff] %vm24_vm7, %v1669_v25  ;;  %v1513_v28 = vadd.f32 %v1481_v3, %v3212_v54  ;;  %v1517_v43 = vadd.f32 %v3214_v23, %v1356_v20  ;;  %v1450_v38 = vadd.f32 %v3262_v22, %v2980_v14  ;;  %v1609_v18 = vadd.f32 %v3207_v7, %v2980_v14 }
 0x145   :  { %1703 = vst.msk [vmem:[#allocation3 + $0x113] sm:$0xff] %vm24_vm7, %v1671_v9  ;;  %v1676_v21 = vadd.f32 %v1644_v52, %v1515_v40  ;;  %v1319_v13 = vmul.f32 0.004433048, %v1287_v19  ;;  %v1613_v50 = vadd.f32 %v3262_v22, %v3207_v7  ;;  %v1511_v54 = vadd.f32 %v3100_v56, %v1350_v11  ;;  %v3549_v19 = vld [vmem:[#allocation14_spill] sm:$0xff] }
 0x146   :  { %v1826_v35 = vld [vmem:[#allocation3 + $0xde] sm:$0xff]  ;;  %v1674_v23 = vadd.f32 %v3209_v34, %v1513_v28  ;;  %v1357_v2 = vadd.f32 %v1325_v51, %v1197_v57  ;;  %v1482_v53 = vmul.f32 0.054005582, %v1450_v38  ;;  %v1678_v14 = vadd.f32 %v3121_v41, %v1517_v43  ;;  %v3548_v57 = vld [vmem:[#allocation8_spill] sm:$0xff] }
 0x147   :  { %v1986_v42 = vld [vmem:[#allocation3 + $0xdd] sm:$0xff]  ;;  %v1858_v0 = vadd.f32 %v1826_v35, %v1794_v45  ;;  %1708 = vst.msk [vmem:[#allocation3 + $0x153] sm:$0xff] %vm24_vm7, %v1676_v21  ;;  %v1351_v40 = vadd.f32 %v1319_v13, %v3219_v15  ;;  %v1486_v6 = vmul.f32 0.054005582, %v1454_v8  ;;  %v1672_v7 = vadd.f32 %v3222_v33, %v1511_v54  ;;  %v2118_v35 = vld [vmem:[#allocation3 + $0x10a] sm:$0xff] }
 0x148   :  { %v2018_v4 = vadd.f32 %v1986_v42, %v1954_v16  ;;  %v2146_v10 = vld [vmem:[#allocation3 + $0xdc] sm:$0xff]  ;;  %1706 = vst.msk [vmem:[#allocation3 + $0x13b] sm:$0xff] %vm24_vm7, %v1674_v23  ;;  %v1514_v46 = vadd.f32 %v1482_v53, %v1353_v17  ;;  %v1645_v56 = vmul.f32 0.24203622, %v1613_v50  ;;  %v2332_v34 = vmul.f32 %v3237_v32, %v3237_v32  ;;  %v2116_v50 = vld [vmem:[#allocation3 + $0xf2] sm:$0xff] }
 0x149   :  { %v2114_v51 = vld [vmem:[#allocation3 + $0xda] sm:$0xff]  ;;  %v1890_v63 = vmul.f32 0.004433048, %v1858_v0  ;;  %v1641_v55 = vmul.f32 0.24203622, %v1609_v18  ;;  %v1512_v41 = vadd.f32 %v3189_v44, %v1351_v40  ;;  %v1516_v15 = vadd.f32 %v3249_v59, %v3164_v58  ;;  %1704 = vst.msk [vmem:[#allocation3 + $0x123] sm:$0xff] %vm24_vm7, %v1672_v7 }
 0x14a   :  { %v2178_v33 = vadd.f32 %v2146_v10, %v2114_v51  ;;  %v1518_v1 = vadd.f32 %v1486_v6, %v1357_v2  ;;  %v1675_v26 = vadd.f32 %v1643_v36, %v1514_v46  ;;  %v2238_v32 = vadd.f32 %v3228_v60, %v3252_v47  ;;  %1710 = vst.msk [vmem:[#allocation3 + $0x16b] sm:$0xff] %vm24_vm7, %v1678_v14  ;;  %v1958_v59 = vld [vmem:[#allocation3 + $0x109] sm:$0xff]  ;;  %v3550_v43 = vld [vmem:[#allocation11_spill] sm:$0xff] }
 0x14b   :  { %v1922_v17 = vadd.f32 %v1890_v63, %v3247_v12  ;;  %v2050_v8 = vmul.f32 0.054005582, %v2018_v4  ;;  %v1828_v61 = vld [vmem:[#allocation3 + $0xf6] sm:$0xff]  ;;  %v1673_v5 = vadd.f32 %v1641_v55, %v1512_v41  ;;  %v2240_v58 = vadd.f32 %v3239_v31, %v3254_v37  ;;  %v2425_v18 = vld [vmem:[#allocation2 + $0xa0] sm:$0xff] }
 0x14c   :  { %v1988_v44 = vld [vmem:[#allocation3 + $0xf5] sm:$0xff]  ;;  %v1860_v27 = vadd.f32 %v1828_v61, %v1796_v30  ;;  %v1990_v20 = vld [vmem:[#allocation3 + $0x10d] sm:$0xff]  ;;  %v1677_v3 = vadd.f32 %v1645_v56, %v1516_v15  ;;  %1707 = vst.msk [vmem:[#allocation3 + $0x143] sm:$0xff] %vm24_vm7, %v1675_v26  ;;  %v1764_v60 = vmul.f32 0.39905027, %v1732_v49  ;;  %v2360_v11 = vadd.f32 %v3549_v19, %v3548_v57  ;;  %v1723_v26 = vld [vmem:[#allocation3 + $0x83] sm:$0xff] }
 0x14d   :  { %v1830_v25 = vld [vmem:[#allocation3 + $0x10e] sm:$0xff]  ;;  %v2020_v36 = vadd.f32 %v1988_v44, %v1956_v24  ;;  %v2082_v47 = vadd.f32 %v2050_v8, %v1922_v17  ;;  %v2022_v9 = vadd.f32 %v1990_v20, %v1958_v59  ;;  %1705 = vst.msk [vmem:[#allocation3 + $0x12b] sm:$0xff] %vm24_vm7, %v1673_v5  ;;  %v2210_v28 = vmul.f32 0.24203622, %v2178_v33 }
 0x14e   :  { %v1862_v12 = vadd.f32 %v1830_v25, %v1798_v62  ;;  %v2148_v52 = vld [vmem:[#allocation3 + $0xf4] sm:$0xff]  ;;  %v1892_v31 = vmul.f32 0.004433048, %v1860_v27  ;;  %v2150_v37 = vld [vmem:[#allocation3 + $0x10c] sm:$0xff]  ;;  %v1679_v38 = vadd.f32 %v3550_v43, %v1518_v1  ;;  %v2363_v45 = vsel %vm24_vm7, %v2332_v34, 0.0  ;;  %1709 = vst.msk [vmem:[#allocation3 + $0x15b] sm:$0xff] %vm24_vm7, %v1677_v3 }
 0x14f   :  { %v2302_v21 = vsub.f32 %v2425_v18, %v2238_v32  ;;  %v1766_v13 = vmul.f32 0.39905027, %v1734_v48  ;;  %v2242_v42 = vadd.f32 %v2210_v28, %v2082_v47  ;;  %v2052_v23 = vmul.f32 0.054005582, %v2020_v36  ;;  %v2426_v53 = vld [vmem:[#allocation2 + $0xb0] sm:$0xff]  ;;  %v1725_v32 = vld [vmem:[#allocation3 + $0x9b] sm:$0xff] }
 0x150   :  { %v1894_v16 = vmul.f32 0.004433048, %v1862_v12  ;;  %v1924_v54 = vadd.f32 %v1892_v31, %v1764_v60  ;;  %v2180_v2 = vadd.f32 %v2148_v52, %v2116_v50  ;;  %v2304_v0 = vsub.f32 %v2426_v53, %v2240_v58  ;;  %v3551_v40 = vld [vmem:[#allocation17_spill] sm:$0xff]  ;;  %1711 = vst.msk [vmem:[#allocation3 + $0x173] sm:$0xff] %vm24_vm7, %v1679_v38  ;;  %v1738_v61 = vld [vmem:[#allocation3 + $0x13b] sm:$0xff]  ;;  %v1785_v59 = vld [vmem:[#allocation3 + $0x68] sm:$0xff] }
 0x151   :  { %v2054_v10 = vmul.f32 0.054005582, %v2022_v9  ;;  %v2182_v14 = vadd.f32 %v2150_v37, %v2118_v35  ;;  %v2362_v6 = vadd.f32 %v3551_v40, %v2360_v11  ;;  %v2334_v46 = vmul.f32 %v2302_v21, %v2302_v21  ;;  %v3552_v34 = vld [vmem:[#allocation9_spill] sm:$0xff]  ;;  %v1736_v36 = vld [vmem:[#allocation3 + $0x123] sm:$0xff]  ;;  %v1733_v28 = vld [vmem:[#allocation3 + $0xfb] sm:$0xff] }
 0x152   :  { %v1926_v4 = vadd.f32 %v1894_v16, %v1766_v13  ;;  %v2084_v7 = vadd.f32 %v2052_v23, %v1924_v54  ;;  %v2325_v51 = vmul.f32 %v3552_v34, %v3552_v34  ;;  %v2306_v63 = vsub.f32 %v2963_v29, %v2242_v42  ;;  %v1719_v24 = vld [vmem:[#allocation3 + $0x53] sm:$0xff]  ;;  %v1721_v1 = vld [vmem:[#allocation3 + $0x6b] sm:$0xff]  ;;  %v1731_v60 = vld [vmem:[#allocation3 + $0xe3] sm:$0xff] }
 0x153   :  { %v2364_v49 = vadd.f32 %v2363_v45, %v2362_v6  ;;  %v2212_v55 = vmul.f32 0.24203622, %v2180_v2  ;;  %v2336_v41 = vmul.f32 %v2304_v0, %v2304_v0  ;;  %v2214_v48 = vmul.f32 0.24203622, %v2182_v14  ;;  %v1740_v44 = vld [vmem:[#allocation3 + $0x153] sm:$0xff]  ;;  %v1729_v58 = vld [vmem:[#allocation3 + $0xcb] sm:$0xff] }
 0x154   :  { %v2086_v56 = vadd.f32 %v2054_v10, %v1926_v4  ;;  %v2365_v15 = vsel %vm24_vm7, %v2334_v46, 0.0  ;;  %v2386_v62 = vsel %vm24_vm7, %v2325_v51, 0.0  ;;  %v2338_v8 = vmul.f32 %v2306_v63, %v2306_v63  ;;  %v1727_v5 = vld [vmem:[#allocation3 + $0xb3] sm:$0xff]  ;;  %v1742_v3 = vld [vmem:[#allocation3 + $0x16b] sm:$0xff]  ;;  %v1787_v12 = vld [vmem:[#allocation3 + $0x80] sm:$0xff] }
 0x155   :  { %v2244_v30 = vadd.f32 %v2212_v55, %v2084_v7  ;;  %v2366_v17 = vadd.f32 %v2365_v15, %v2364_v49  ;;  %v1783_v29 = vld [vmem:[#allocation3 + $0x50] sm:$0xff]  ;;  %v2367_v20 = vsel %vm24_vm7, %v2336_v41, 0.0  ;;  %v3320_v47 = vmul.f32 0.39905027, %v1719_v24  ;;  %v1819_v9 = vld [vmem:[#allocation3 + $0x86] sm:$0xff]  ;;  %v1789_v50 = vld [vmem:[#allocation3 + $0x98] sm:$0xff] }
 0x156   :  { %v2246_v33 = vadd.f32 %v2214_v48, %v2086_v56  ;;  %v1815_v25 = vld [vmem:[#allocation3 + $0x56] sm:$0xff]  ;;  %v1817_v27 = vld [vmem:[#allocation3 + $0x6e] sm:$0xff]  ;;  %v3326_v37 = vmul.f32 0.39905027, %v1721_v1  ;;  %v3328_v43 = vmul.f32 0.39905027, %v1723_v26 }
 0x157   :  { %v3553_v52 = vld [vmem:[#allocation20_spill] sm:$0xff]  ;;  %v3555_v19 = vld [vmem:[#allocation21_spill] sm:$0xff]  ;;  %v2427_v38 = vld [vmem:[#allocation2 + $0xe0] sm:$0xff]  ;;  %v3330_v18 = vmul.f32 0.39905027, %v1738_v61  ;;  %v2368_v2 = vadd.f32 %v2367_v20, %v2366_v17  ;;  %v2369_v53 = vsel %vm24_vm7, %v2338_v8, 0.0  ;;  %v1847_v63 = vadd.f32 %v1815_v25, %v1783_v29 }
 0x158   :  { %v3323_v57 = vadd.f32 %v2386_v62, %v3553_v52  ;;  %v2308_v11 = vsub.f32 %v3555_v19, %v2244_v30  ;;  %v1735_v31 = vld [vmem:[#allocation3 + $0x113] sm:$0xff]  ;;  %v2310_v45 = vsub.f32 %v2427_v38, %v2246_v33  ;;  %v3332_v21 = vmul.f32 0.39905027, %v1740_v44  ;;  %v1793_v35 = vld [vmem:[#allocation3 + $0xc8] sm:$0xff]  ;;  %v1821_v42 = vld [vmem:[#allocation3 + $0x9e] sm:$0xff] }
 0x159   :  { %v3334_v13 = vmul.f32 0.39905027, %v1725_v32  ;;  %v1791_v16 = vld [vmem:[#allocation3 + $0xb0] sm:$0xff]  ;;  %v3337_v0 = vmul.f32 0.39905027, %v1736_v36  ;;  %v1795_v14 = vld [vmem:[#allocation3 + $0xe0] sm:$0xff]  ;;  %v1849_v55 = vadd.f32 %v1817_v27, %v1785_v59  ;;  %v1851_v62 = vadd.f32 %v1819_v9, %v1787_v12 }
 0x15a   :  { %3554 = vst [vmem:[#allocation7_spill] sm:$0xff] %v3323_v57  ;;  %v1823_v54 = vld [vmem:[#allocation3 + $0xb6] sm:$0xff]  ;;  %v1825_v23 = vld [vmem:[#allocation3 + $0xce] sm:$0xff]  ;;  %v3339_v4 = vmul.f32 0.39905027, %v1742_v3  ;;  %v1827_v40 = vld [vmem:[#allocation3 + $0xe6] sm:$0xff]  ;;  %v2340_v15 = vmul.f32 %v2308_v11, %v2308_v11  ;;  %v2370_v17 = vadd.f32 %v2369_v53, %v2368_v2  ;;  %v2342_v8 = vmul.f32 %v2310_v45, %v2310_v45 }
 0x15b   :  { %v1737_v10 = vld [vmem:[#allocation3 + $0x12b] sm:$0xff]  ;;  %v1975_v46 = vld [vmem:[#allocation3 + $0x55] sm:$0xff]  ;;  %v1739_v34 = vld [vmem:[#allocation3 + $0x143] sm:$0xff]  ;;  %v3341_v51 = vmul.f32 0.39905027, %v1727_v5  ;;  %v1853_v3 = vadd.f32 %v1821_v42, %v1789_v50  ;;  %v1857_v52 = vadd.f32 %v1825_v23, %v1793_v35 }
 0x15c   :  { %3556 = vst [vmem:[#allocation19_spill] sm:$0xff] %v3339_v4  ;;  %v1943_v6 = vld [vmem:[#allocation3 + $0x51] sm:$0xff]  ;;  %v1945_v7 = vld [vmem:[#allocation3 + $0x69] sm:$0xff]  ;;  %v3343_v49 = vmul.f32 0.39905027, %v1729_v58  ;;  %v1947_v41 = vld [vmem:[#allocation3 + $0x81] sm:$0xff] }
 0x15d   :  { %v1977_v56 = vld [vmem:[#allocation3 + $0x6d] sm:$0xff]  ;;  %v1949_v48 = vld [vmem:[#allocation3 + $0x99] sm:$0xff]  ;;  %v1979_v30 = vld [vmem:[#allocation3 + $0x85] sm:$0xff]  ;;  %v3345_v1 = vmul.f32 0.39905027, %v1731_v60  ;;  %v1855_v60 = vadd.f32 %v1823_v54, %v1791_v16  ;;  %v2371_v45 = vsel %vm24_vm7, %v2340_v15, 0.0 }
 0x15e   :  { %v1981_v24 = vld [vmem:[#allocation3 + $0x9d] sm:$0xff]  ;;  %v3347_v26 = vmul.f32 0.39905027, %v1733_v28  ;;  %v3349_v61 = vmul.f32 0.39905027, %v1735_v31  ;;  %v1799_v5 = vld [vmem:[#allocation3 + $0x110] sm:$0xff]  ;;  %v1859_v28 = vadd.f32 %v1827_v40, %v1795_v14  ;;  %v3357_v31 = vadd.f32 %v1975_v46, %v1943_v6 }
 0x15f   :  { %v1741_v33 = vld [vmem:[#allocation3 + $0x15b] sm:$0xff]  ;;  %v3351_v44 = vmul.f32 0.39905027, %v1737_v10  ;;  %v1801_v58 = vld [vmem:[#allocation3 + $0x128] sm:$0xff]  ;;  %v1743_v29 = vld [vmem:[#allocation3 + $0x173] sm:$0xff]  ;;  %v3359_v38 = vadd.f32 %v1977_v56, %v1945_v7  ;;  %v3362_v22 = vadd.f32 %v1979_v30, %v1947_v41  ;;  %v3364_v50 = vadd.f32 %v1981_v24, %v1949_v48 }
 0x160   :  { %v1797_v32 = vld [vmem:[#allocation3 + $0xf8] sm:$0xff]  ;;  %v3353_v59 = vmul.f32 0.39905027, %v1739_v34  ;;  %v1803_v25 = vld [vmem:[#allocation3 + $0x140] sm:$0xff]  ;;  %v3355_v19 = vmul.f32 0.39905027, %v1741_v33  ;;  %v2372_v16 = vadd.f32 %v2371_v45, %v2370_v17 }
 0x161   :  { %v1805_v27 = vld [vmem:[#allocation3 + $0x158] sm:$0xff]  ;;  %v1832_v12 = vld [vmem:[#allocation3 + $0x126] sm:$0xff]  ;;  %v1833_v9 = vld [vmem:[#allocation3 + $0x12e] sm:$0xff]  ;;  %v1879_v34 = vmul.f32 0.004433048, %v1847_v63  ;;  %3558 = vst [vmem:[#allocation18_spill] sm:$0xff] %v3364_v50 }
 0x162   :  { %v1829_v20 = vld [vmem:[#allocation3 + $0xfe] sm:$0xff]  ;;  %v1831_v36 = vld [vmem:[#allocation3 + $0x116] sm:$0xff]  ;;  %3557 = vst [vmem:[#allocation13_spill] sm:$0xff] %v3355_v19  ;;  %v1835_v2 = vld [vmem:[#allocation3 + $0x146] sm:$0xff]  ;;  %v2373_v35 = vsel %vm24_vm7, %v2342_v8, 0.0  ;;  %v1865_v33 = vadd.f32 %v1833_v9, %v1801_v58 }
 0x163   :  { %v1834_v11 = vld [vmem:[#allocation3 + $0x13e] sm:$0xff]  ;;  %v1836_v53 = vld [vmem:[#allocation3 + $0x156] sm:$0xff]  ;;  %v3367_v23 = vmul.f32 0.39905027, %v1743_v29  ;;  %v1838_v14 = vld [vmem:[#allocation3 + $0x16e] sm:$0xff]  ;;  %v1861_v40 = vadd.f32 %v1829_v20, %v1797_v32  ;;  %v1863_v56 = vadd.f32 %v1831_v36, %v1799_v5  ;;  %v1867_v30 = vadd.f32 %v1835_v2, %v1803_v25 }
 0x164   :  { %v1837_v10 = vld [vmem:[#allocation3 + $0x15e] sm:$0xff]  ;;  %v1804_v6 = vld [vmem:[#allocation3 + $0x150] sm:$0xff]  ;;  %v1806_v41 = vld [vmem:[#allocation3 + $0x168] sm:$0xff]  ;;  %v1881_v17 = vmul.f32 0.004433048, %v1849_v55 }
 0x165   :  { %v1800_v42 = vld [vmem:[#allocation3 + $0x120] sm:$0xff]  ;;  %v1802_v54 = vld [vmem:[#allocation3 + $0x138] sm:$0xff]  ;;  %3559 = vst [vmem:[#allocation16_spill] sm:$0xff] %v3367_v23  ;;  %v1807_v7 = vld [vmem:[#allocation3 + $0x170] sm:$0xff]  ;;  %v1868_v48 = vadd.f32 %v1836_v53, %v1804_v6  ;;  %v1869_v24 = vadd.f32 %v1837_v10, %v1805_v27  ;;  %v1870_v57 = vadd.f32 %v1838_v14, %v1806_v41  ;;  %v1883_v39 = vmul.f32 0.004433048, %v1851_v62 }
 0x166   :  { %v1839_v46 = vld [vmem:[#allocation3 + $0x176] sm:$0xff]  ;;  %v1864_v15 = vadd.f32 %v1832_v12, %v1800_v42  ;;  %v1866_v63 = vadd.f32 %v1834_v11, %v1802_v54  ;;  %v1885_v29 = vmul.f32 0.004433048, %v1853_v3  ;;  %v1887_v23 = vmul.f32 0.004433048, %v1855_v60  ;;  %v1953_v55 = vld [vmem:[#allocation3 + $0xc9] sm:$0xff] }
 0x167   :  { %v1951_v45 = vld [vmem:[#allocation3 + $0xb1] sm:$0xff]  ;;  %v1871_v4 = vadd.f32 %v1839_v46, %v1807_v7  ;;  %v1889_v32 = vmul.f32 0.004433048, %v1857_v52  ;;  %v1891_v20 = vmul.f32 0.004433048, %v1859_v28  ;;  %v3369_v12 = vadd.f32 %v2373_v35, %v2372_v16  ;;  %v1955_v11 = vld [vmem:[#allocation3 + $0xe1] sm:$0xff] }
 0x168   :  { %v1983_v8 = vld [vmem:[#allocation3 + $0xb5] sm:$0xff]  ;;  %v1893_v19 = vmul.f32 0.004433048, %v1861_v40  ;;  %v1895_v50 = vmul.f32 0.004433048, %v1863_v56  ;;  %v3374_v3 = vadd.f32 %v1879_v34, %v3320_v47  ;;  %v3377_v60 = vadd.f32 %v1881_v17, %v3326_v37  ;;  %v1961_v28 = vld [vmem:[#allocation3 + $0x129] sm:$0xff] }
 0x169   :  { %v1896_v5 = vmul.f32 0.004433048, %v1864_v15  ;;  %v1897_v36 = vmul.f32 0.004433048, %v1865_v33  ;;  %v2015_v58 = vadd.f32 %v1983_v8, %v1951_v45  ;;  %v1898_v25 = vmul.f32 0.004433048, %v1866_v63 }
 0x16a   :  { %v1899_v9 = vmul.f32 0.004433048, %v1867_v30  ;;  %v1900_v27 = vmul.f32 0.004433048, %v1868_v48  ;;  %v1957_v2 = vld [vmem:[#allocation3 + $0xf9] sm:$0xff]  ;;  %v1959_v52 = vld [vmem:[#allocation3 + $0x111] sm:$0xff]  ;;  %v3380_v35 = vadd.f32 %v1883_v39, %v3328_v43  ;;  %v3383_v42 = vadd.f32 %v1885_v29, %v3334_v13 }
 0x16b   :  { %v1901_v53 = vmul.f32 0.004433048, %v1869_v24  ;;  %v3371_v62 = vmul.f32 0.004433048, %v1870_v57  ;;  %v1985_v10 = vld [vmem:[#allocation3 + $0xcd] sm:$0xff]  ;;  %v3386_v54 = vadd.f32 %v1887_v23, %v3341_v51  ;;  %v1987_v57 = vld [vmem:[#allocation3 + $0xe5] sm:$0xff]  ;;  %v3389_v37 = vadd.f32 %v1889_v32, %v3343_v49 }
 0x16c   :  { %v1903_v16 = vmul.f32 0.004433048, %v1871_v4  ;;  %v1989_v14 = vld [vmem:[#allocation3 + $0xfd] sm:$0xff]  ;;  %v1991_v47 = vld [vmem:[#allocation3 + $0x115] sm:$0xff]  ;;  %v3392_v40 = vadd.f32 %v1891_v20, %v3345_v1  ;;  %v3395_v4 = vadd.f32 %v1893_v19, %v3347_v26  ;;  %v3398_v39 = vadd.f32 %v1895_v50, %v3349_v61  ;;  %v1992_v43 = vld [vmem:[#allocation3 + $0x125] sm:$0xff] }
 0x16d   :  { %v1960_v34 = vld [vmem:[#allocation3 + $0x121] sm:$0xff]  ;;  %v1993_v13 = vld [vmem:[#allocation3 + $0x12d] sm:$0xff]  ;;  %v3401_v23 = vadd.f32 %v1896_v5, %v3337_v0  ;;  %v3404_v6 = vadd.f32 %v1897_v36, %v3351_v44  ;;  %v3407_v49 = vadd.f32 %v1898_v25, %v3330_v18  ;;  %v3410_v1 = vadd.f32 %v1899_v9, %v3353_v59  ;;  %v1996_v7 = vld [vmem:[#allocation3 + $0x155] sm:$0xff] }
 0x16e   :  { %v1994_v51 = vld [vmem:[#allocation3 + $0x13d] sm:$0xff]  ;;  %v1995_v19 = vld [vmem:[#allocation3 + $0x145] sm:$0xff]  ;;  %v3413_v50 = vadd.f32 %v1900_v27, %v3332_v21  ;;  %v2017_v0 = vadd.f32 %v1985_v10, %v1953_v55  ;;  %v2019_v15 = vadd.f32 %v1987_v57, %v1955_v11  ;;  %v2021_v33 = vadd.f32 %v1989_v14, %v1957_v2  ;;  %v1964_v44 = vld [vmem:[#allocation3 + $0x151] sm:$0xff] }
 0x16f   :  { %v1963_v26 = vld [vmem:[#allocation3 + $0x141] sm:$0xff]  ;;  %v1962_v61 = vld [vmem:[#allocation3 + $0x139] sm:$0xff]  ;;  %v1966_v63 = vld [vmem:[#allocation3 + $0x169] sm:$0xff]  ;;  %v2023_v18 = vadd.f32 %v1991_v47, %v1959_v52  ;;  %v2024_v30 = vadd.f32 %v1992_v43, %v1960_v34  ;;  %v2025_v48 = vadd.f32 %v1993_v13, %v1961_v28  ;;  %v2028_v8 = vadd.f32 %v1996_v7, %v1964_v44 }
 0x170   :  { %v1965_v46 = vld [vmem:[#allocation3 + $0x159] sm:$0xff]  ;;  %v1998_v41 = vld [vmem:[#allocation3 + $0x16d] sm:$0xff]  ;;  %v2026_v59 = vadd.f32 %v1994_v51, %v1962_v61  ;;  %v2027_v45 = vadd.f32 %v1995_v19, %v1963_v26  ;;  %v2039_v29 = vmul.f32 0.054005582, %v3357_v31  ;;  %v2041_v21 = vmul.f32 0.054005582, %v3359_v38 }
 0x171   :  { %v1997_v56 = vld [vmem:[#allocation3 + $0x15d] sm:$0xff]  ;;  %v1967_v24 = vld [vmem:[#allocation3 + $0x171] sm:$0xff]  ;;  %v2043_v20 = vmul.f32 0.054005582, %v3362_v22  ;;  %v2047_v25 = vmul.f32 0.054005582, %v2015_v58  ;;  %v2030_v27 = vadd.f32 %v1998_v41, %v1966_v63 }
 0x172   :  { %v1999_v17 = vld [vmem:[#allocation3 + $0x175] sm:$0xff]  ;;  %v2029_v32 = vadd.f32 %v1997_v56, %v1965_v46  ;;  %v2049_v55 = vmul.f32 0.054005582, %v2017_v0  ;;  %v2051_v11 = vmul.f32 0.054005582, %v2019_v15  ;;  %v2105_v31 = vld [vmem:[#allocation3 + $0x6a] sm:$0xff]  ;;  %v2073_v46 = vadd.f32 %v2041_v21, %v3377_v60 }
 0x173   :  { %v3560_v5 = vld [vmem:[#allocation18_spill] sm:$0xff]  ;;  %v2053_v2 = vmul.f32 0.054005582, %v2021_v33  ;;  %v3561_v52 = vld [vmem:[#allocation13_spill] sm:$0xff]  ;;  %v2031_v10 = vadd.f32 %v1999_v17, %v1967_v24  ;;  %v2055_v57 = vmul.f32 0.054005582, %v2023_v18 }
 0x174   :  { %v2045_v36 = vmul.f32 0.054005582, %v3560_v5  ;;  %v2103_v9 = vld [vmem:[#allocation3 + $0x52] sm:$0xff]  ;;  %v3420_v28 = vadd.f32 %v1901_v53, %v3561_v52  ;;  %v2056_v14 = vmul.f32 0.054005582, %v2024_v30  ;;  %v3562_v38 = vld [vmem:[#allocation19_spill] sm:$0xff]  ;;  %v2071_v53 = vadd.f32 %v2039_v29, %v3374_v3 }
 0x175   :  { %v2135_v47 = vld [vmem:[#allocation3 + $0x54] sm:$0xff]  ;;  %v1934_v34 = vadd.f32 %v3371_v62, %v3562_v38  ;;  %v3563_v22 = vld [vmem:[#allocation16_spill] sm:$0xff]  ;;  %v2057_v58 = vmul.f32 0.054005582, %v2025_v48  ;;  %v2058_v13 = vmul.f32 0.054005582, %v2026_v59  ;;  %v2075_v62 = vadd.f32 %v2043_v20, %v3380_v35 }
 0x176   :  { %v3425_v43 = vadd.f32 %v1903_v16, %v3563_v22  ;;  %v2107_v51 = vld [vmem:[#allocation3 + $0x82] sm:$0xff]  ;;  %v2109_v26 = vld [vmem:[#allocation3 + $0x9a] sm:$0xff]  ;;  %v2137_v19 = vld [vmem:[#allocation3 + $0x6c] sm:$0xff]  ;;  %v2059_v7 = vmul.f32 0.054005582, %v2027_v45  ;;  %v2167_v63 = vadd.f32 %v2135_v47, %v2103_v9  ;;  %v2077_v48 = vadd.f32 %v2045_v36, %v3383_v42 }
 0x177   :  { %v2060_v61 = vmul.f32 0.054005582, %v2028_v8  ;;  %v2152_v56 = vld [vmem:[#allocation3 + $0x124] sm:$0xff]  ;;  %v2154_v0 = vld [vmem:[#allocation3 + $0x13c] sm:$0xff]  ;;  %v2061_v15 = vmul.f32 0.054005582, %v2029_v32  ;;  %v3434_v59 = vadd.f32 %v2047_v25, %v3386_v54  ;;  %v2169_v60 = vadd.f32 %v2137_v19, %v2105_v31 }
 0x178   :  { %v2062_v33 = vmul.f32 0.054005582, %v2030_v27  ;;  %v2139_v44 = vld [vmem:[#allocation3 + $0x84] sm:$0xff]  ;;  %v2141_v16 = vld [vmem:[#allocation3 + $0x9c] sm:$0xff]  ;;  %v3430_v30 = vmul.f32 0.054005582, %v2031_v10  ;;  %v3437_v24 = vadd.f32 %v2049_v55, %v3389_v37  ;;  %v3440_v17 = vadd.f32 %v2051_v11, %v3392_v40 }
 0x179   :  { %v2120_v41 = vld [vmem:[#allocation3 + $0x122] sm:$0xff]  ;;  %v2122_v18 = vld [vmem:[#allocation3 + $0x13a] sm:$0xff]  ;;  %v2124_v8 = vld [vmem:[#allocation3 + $0x152] sm:$0xff]  ;;  %v3443_v29 = vadd.f32 %v2053_v2, %v3395_v4  ;;  %v3446_v21 = vadd.f32 %v2055_v57, %v3398_v39  ;;  %v2171_v54 = vadd.f32 %v2139_v44, %v2107_v51  ;;  %v2173_v32 = vadd.f32 %v2141_v16, %v2109_v26 }
 0x17a   :  { %v2156_v3 = vld [vmem:[#allocation3 + $0x154] sm:$0xff]  ;;  %v2184_v35 = vadd.f32 %v2152_v56, %v2120_v41  ;;  %v2186_v45 = vadd.f32 %v2154_v0, %v2122_v18  ;;  %v2158_v42 = vld [vmem:[#allocation3 + $0x16c] sm:$0xff]  ;;  %v2088_v20 = vadd.f32 %v2056_v14, %v3401_v23  ;;  %v2090_v37 = vadd.f32 %v2058_v13, %v3407_v49  ;;  %v2115_v11 = vld [vmem:[#allocation3 + $0xe2] sm:$0xff] }
 0x17b   :  { %v2111_v5 = vld [vmem:[#allocation3 + $0xb2] sm:$0xff]  ;;  %v2188_v40 = vadd.f32 %v2156_v3, %v2124_v8  ;;  %v2199_v25 = vmul.f32 0.24203622, %v2167_v63  ;;  %v2126_v9 = vld [vmem:[#allocation3 + $0x16a] sm:$0xff]  ;;  %v3451_v27 = vadd.f32 %v2057_v58, %v3404_v6  ;;  %v3454_v4 = vadd.f32 %v2059_v7, %v3410_v1  ;;  %v2117_v52 = vld [vmem:[#allocation3 + $0xfa] sm:$0xff] }
 0x17c   :  { %v2143_v36 = vld [vmem:[#allocation3 + $0xb4] sm:$0xff]  ;;  %v2092_v39 = vadd.f32 %v2060_v61, %v3413_v50  ;;  %v2113_v55 = vld [vmem:[#allocation3 + $0xca] sm:$0xff]  ;;  %v2201_v2 = vmul.f32 0.24203622, %v2169_v60  ;;  %v2190_v49 = vadd.f32 %v2158_v42, %v2126_v9  ;;  %v2216_v57 = vmul.f32 0.24203622, %v2184_v35 }
 0x17d   :  { %v2145_v23 = vld [vmem:[#allocation3 + $0xcc] sm:$0xff]  ;;  %v2147_v10 = vld [vmem:[#allocation3 + $0xe4] sm:$0xff]  ;;  %v2218_v14 = vmul.f32 0.24203622, %v2186_v45  ;;  %v2231_v31 = vadd.f32 %v2199_v25, %v2071_v53  ;;  %v2094_v47 = vadd.f32 %v2062_v33, %v1934_v34  ;;  %v2175_v6 = vadd.f32 %v2143_v36, %v2111_v5  ;;  %v2149_v1 = vld [vmem:[#allocation3 + $0xfc] sm:$0xff] }
 0x17e   :  { %v2119_v38 = vld [vmem:[#allocation3 + $0x112] sm:$0xff]  ;;  %v2121_v22 = vld [vmem:[#allocation3 + $0x12a] sm:$0xff]  ;;  %v2203_v58 = vmul.f32 0.24203622, %v2171_v54  ;;  %v2205_v13 = vmul.f32 0.24203622, %v2173_v32  ;;  %v2233_v19 = vadd.f32 %v2201_v2, %v2073_v46  ;;  %v2248_v7 = vadd.f32 %v2216_v57, %v2088_v20 }
 0x17f   :  { %v2151_v51 = vld [vmem:[#allocation3 + $0x114] sm:$0xff]  ;;  %v2153_v26 = vld [vmem:[#allocation3 + $0x12c] sm:$0xff]  ;;  %v2220_v50 = vmul.f32 0.24203622, %v2188_v40  ;;  %v2250_v61 = vadd.f32 %v2218_v14, %v2090_v37  ;;  %v3458_v56 = vadd.f32 %v2061_v15, %v3420_v28  ;;  %v2177_v0 = vadd.f32 %v2145_v23, %v2113_v55  ;;  %v2123_v18 = vld [vmem:[#allocation3 + $0x142] sm:$0xff] }
 0x180   :  { %v2179_v44 = vadd.f32 %v2147_v10, %v2115_v11  ;;  %v2235_v16 = vadd.f32 %v2203_v58, %v2075_v62  ;;  %v2222_v53 = vmul.f32 0.24203622, %v2190_v49  ;;  %v2237_v34 = vadd.f32 %v2205_v13, %v2077_v48  ;;  %v2428_v63 = vld [vmem:[#allocation2 + $0x68] sm:$0xff]  ;;  %v2125_v46 = vld [vmem:[#allocation3 + $0x15a] sm:$0xff]  ;;  %v2430_v15 = vld [vmem:[#allocation2 + $0xf0] sm:$0xff] }
 0x181   :  { %v2252_v33 = vadd.f32 %v2220_v50, %v2092_v39  ;;  %v2295_v41 = vsub.f32 %v2428_v63, %v2231_v31  ;;  %v2155_v3 = vld [vmem:[#allocation3 + $0x144] sm:$0xff]  ;;  %v2181_v60 = vadd.f32 %v2149_v1, %v2117_v52  ;;  %v2183_v35 = vadd.f32 %v2151_v51, %v2119_v38  ;;  %v2157_v42 = vld [vmem:[#allocation3 + $0x15c] sm:$0xff]  ;;  %v2434_v11 = vld [vmem:[#allocation2 + $0x110] sm:$0xff] }
 0x182   :  { %v2185_v45 = vadd.f32 %v2153_v26, %v2121_v22  ;;  %v2207_v8 = vmul.f32 0.24203622, %v2175_v6  ;;  %v2254_v54 = vadd.f32 %v2222_v53, %v2094_v47  ;;  %v2429_v32 = vld [vmem:[#allocation2 + $0x78] sm:$0xff]  ;;  %v2312_v20 = vsub.f32 %v2430_v15, %v2248_v7  ;;  %v2431_v37 = vld [vmem:[#allocation2 + $0x100] sm:$0xff]  ;;  %v2432_v40 = vld [vmem:[#allocation2 + $0x88] sm:$0xff] }
 0x183   :  { %v2297_v28 = vsub.f32 %v2429_v32, %v2233_v19  ;;  %v2314_v62 = vsub.f32 %v2431_v37, %v2250_v61  ;;  %v2209_v5 = vmul.f32 0.24203622, %v2177_v0  ;;  %v2211_v48 = vmul.f32 0.24203622, %v2179_v44  ;;  %v2433_v39 = vld [vmem:[#allocation2 + $0x98] sm:$0xff]  ;;  %v3564_v14 = vld [vmem:[#allocation15_spill] sm:$0xff] }
 0x184   :  { %v2239_v36 = vadd.f32 %v2207_v8, %v3434_v59  ;;  %v2299_v25 = vsub.f32 %v2432_v40, %v2235_v16  ;;  %v2187_v9 = vadd.f32 %v2155_v3, %v2123_v18  ;;  %v2301_v55 = vsub.f32 %v2433_v39, %v2237_v34  ;;  %v2435_v58 = vld [vmem:[#allocation2 + $0xa8] sm:$0xff]  ;;  %v2436_v7 = vld [vmem:[#allocation2 + $0xb8] sm:$0xff]  ;;  %v3565_v0 = vld [vmem:[#allocation7_spill] sm:$0xff] }
 0x185   :  { %v2316_v2 = vsub.f32 %v2434_v11, %v2252_v33  ;;  %v2327_v52 = vmul.f32 %v2295_v41, %v2295_v41  ;;  %v2189_v23 = vadd.f32 %v2157_v42, %v2125_v46  ;;  %v2213_v10 = vmul.f32 0.24203622, %v2181_v60  ;;  %v2127_v16 = vld [vmem:[#allocation3 + $0x172] sm:$0xff]  ;;  %v2437_v34 = vld [vmem:[#allocation2 + $0xc8] sm:$0xff] }
 0x186   :  { %v2241_v49 = vadd.f32 %v2209_v5, %v3437_v24  ;;  %v2243_v57 = vadd.f32 %v2211_v48, %v3440_v17  ;;  %v2318_v31 = vsub.f32 %v3564_v14, %v2254_v54  ;;  %v2329_v47 = vmul.f32 %v2297_v28, %v2297_v28  ;;  %v2159_v53 = vld [vmem:[#allocation3 + $0x174] sm:$0xff] }
 0x187   :  { %v2344_v38 = vmul.f32 %v2312_v20, %v2312_v20  ;;  %v2346_v22 = vmul.f32 %v2314_v62, %v2314_v62  ;;  %v2215_v59 = vmul.f32 0.24203622, %v2183_v35  ;;  %v2217_v6 = vmul.f32 0.24203622, %v2185_v45  ;;  %v2438_v15 = vld [vmem:[#allocation2 + $0xd8] sm:$0xff] }
 0x188   :  { %v2303_v13 = vsub.f32 %v2435_v58, %v2239_v36  ;;  %v2331_v1 = vmul.f32 %v2299_v25, %v2299_v25  ;;  %v2333_v51 = vmul.f32 %v2301_v55, %v2301_v55  ;;  %v2348_v26 = vmul.f32 %v2316_v2, %v2316_v2  ;;  %v2439_v25 = vld [vmem:[#allocation2 + $0xe8] sm:$0xff]  ;;  %v2440_v55 = vld [vmem:[#allocation2 + $0xf8] sm:$0xff] }
 0x189   :  { %v2375_v50 = vsel %vm24_vm7, %v2344_v38, 0.0  ;;  %v2388_v19 = vsel %vm24_vm7, %v2327_v52, 0.0  ;;  %v2245_v24 = vadd.f32 %v2213_v10, %v3443_v29  ;;  %v2305_v17 = vsub.f32 %v2436_v7, %v2241_v49 }
 0x18a   :  { %v2376_v61 = vadd.f32 %v2375_v50, %v3369_v12  ;;  %v2389_v44 = vadd.f32 %v2388_v19, %v3565_v0  ;;  %v2307_v33 = vsub.f32 %v2437_v34, %v2243_v57  ;;  %v2350_v63 = vmul.f32 %v2318_v31, %v2318_v31  ;;  %v2441_v57 = vld [vmem:[#allocation2 + $0x108] sm:$0xff] }
 0x18b   :  { %v2377_v41 = vsel %vm24_vm7, %v2346_v22, 0.0  ;;  %v2390_v18 = vsel %vm24_vm7, %v2329_v47, 0.0  ;;  %v2247_v3 = vadd.f32 %v2215_v59, %v3446_v21  ;;  %v2249_v60 = vadd.f32 %v2217_v6, %v3451_v27  ;;  %v2442_v22 = vld [vmem:[#allocation2 + $0x118] sm:$0xff] }
 0x18c   :  { %v2378_v29 = vadd.f32 %v2377_v41, %v2376_v61  ;;  %v2391_v35 = vadd.f32 %v2390_v18, %v2389_v44  ;;  %v2335_v45 = vmul.f32 %v2303_v13, %v2303_v13  ;;  %v2379_v12 = vsel %vm24_vm7, %v2348_v26, 0.0  ;;  %v3566_v13 = vld [vmem:[#allocation10_spill] sm:$0xff] }
 0x18d   :  { %v2392_v8 = vsel %vm24_vm7, %v2331_v1, 0.0  ;;  %v2394_v46 = vsel %vm24_vm7, %v2333_v51, 0.0  ;;  %v2191_v42 = vadd.f32 %v2159_v53, %v2127_v16  ;;  %v2219_v54 = vmul.f32 0.24203622, %v2187_v9 }
 0x18e   :  { %v2380_v32 = vadd.f32 %v2379_v12, %v2378_v29  ;;  %v2393_v28 = vadd.f32 %v2392_v8, %v2391_v35  ;;  %v2309_v20 = vsub.f32 %v2438_v15, %v2245_v24  ;;  %v2337_v37 = vmul.f32 %v2305_v17, %v2305_v17 }
 0x18f   :  { %v2339_v62 = vmul.f32 %v2307_v33, %v2307_v33  ;;  %v2381_v21 = vsel %vm24_vm7, %v2350_v63, 0.0  ;;  %v2095_v27 = vadd.f32 %v3430_v30, %v3425_v43  ;;  %v2221_v5 = vmul.f32 0.24203622, %v2189_v23 }
 0x190   :  { %v2382_v48 = vadd.f32 %v2381_v21, %v2380_v32  ;;  %v2395_v36 = vadd.f32 %v2394_v46, %v2393_v28  ;;  %v2251_v40 = vadd.f32 %v2219_v54, %v3454_v4  ;;  %v2311_v39 = vsub.f32 %v2439_v25, %v2247_v3 }
 0x191   :  { %v2313_v9 = vsub.f32 %v2440_v55, %v2249_v60  ;;  %v2396_v11 = vsel %vm24_vm7, %v2335_v45, 0.0  ;;  %v2223_v2 = vmul.f32 0.24203622, %v2191_v42  ;;  %v2253_v43 = vadd.f32 %v2221_v5, %v3458_v56 }
 0x192   :  { %v2397_v52 = vadd.f32 %v2396_v11, %v2395_v36  ;;  %2414 = vst.msk [vmem:[%s3500_s1] sm:$0xff] %vm24_vm7, %v2382_v48  ;;  %v2341_v30 = vmul.f32 %v2309_v20, %v2309_v20  ;;  %v2398_v23 = vsel %vm24_vm7, %v2337_v37, 0.0  ;;  %v2400_v4 = vsel %vm24_vm7, %v2339_v62, 0.0 }
 0x193   :  { %v2255_v49 = vadd.f32 %v2223_v2, %v2095_v27  ;;  %v2315_v14 = vsub.f32 %v2441_v57, %v2251_v40  ;;  %v2343_v31 = vmul.f32 %v2311_v39, %v2311_v39  ;;  %v2345_v47 = vmul.f32 %v2313_v9, %v2313_v9 }
 0x194   :  { %v2399_v10 = vadd.f32 %v2398_v23, %v2397_v52  ;;  %v2317_v59 = vsub.f32 %v2442_v22, %v2253_v43  ;;  %v2402_v6 = vsel %vm24_vm7, %v2341_v30, 0.0 }
 0x195   :  { %v2319_v1 = vsub.f32 %v3566_v13, %v2255_v49  ;;  %v2347_v56 = vmul.f32 %v2315_v14, %v2315_v14  ;;  %v2404_v51 = vsel %vm24_vm7, %v2343_v31, 0.0  ;;  %v2406_v26 = vsel %vm24_vm7, %v2345_v47, 0.0 }
 0x196   :  { %v2401_v38 = vadd.f32 %v2400_v4, %v2399_v10  ;;  %v2349_v19 = vmul.f32 %v2317_v59, %v2317_v59 }
 0x197   :  { %v2351_v7 = vmul.f32 %v2319_v1, %v2319_v1  ;;  %v2408_v17 = vsel %vm24_vm7, %v2347_v56, 0.0 }
 0x198   :  { %v2403_v58 = vadd.f32 %v2402_v6, %v2401_v38  ;;  %v2410_v0 = vsel %vm24_vm7, %v2349_v19, 0.0 }
 0x199   :  { %v2412_v16 = vsel %vm24_vm7, %v2351_v7, 0.0 }
 0x19a   :  { %v2405_v50 = vadd.f32 %v2404_v51, %v2403_v58 }
 0x19c   :  { %v2407_v24 = vadd.f32 %v2406_v26, %v2405_v50 }
 0x19e   :  { %v2409_v61 = vadd.f32 %v2408_v17, %v2407_v24 }
 0x1a0   :  { %v2411_v44 = vadd.f32 %v2410_v0, %v2409_v61 }
 0x1a2   :  { %v2413_v53 = vadd.f32 %v2412_v16, %v2411_v44 }
 0x1a4   :  { %2415 = vst.msk [vmem:[%s3500_s1 + $0x8] sm:$0xff] %vm24_vm7, %v2413_v53 }
 0x1a5   :  { %2420 = vsyncpa [#allocation5], 1 }

</bundles_post_ra>
